<compile_context>
chip_gen: v5e
topology: v5e:2x2
jax: 0.10.0
libtpu: 0.0.40
codegen_flags: <defaults>
</compile_context>

<pallas_src>
import math
import numpy as np
import jax
import jax.numpy as jnp
from jax.experimental import pallas as pl
from jax.experimental.pallas import tpu as pltpu

# ---- model hyper-parameters (small, consistent with the module) -------------
D_MODEL = 32
NUM_HEADS = 4
HEAD_DIM = D_MODEL // NUM_HEADS
L_IMG = 16
L_WORD = 8
BATCH = 2
LN_EPS = 1e-5
NEG_BIG = -1e30        # finite "masked" bias (avoids -inf -> NaN softmax rows)


# ---- small shared helper -----------------------------------------------------
def _layernorm(x, gamma, beta):
    mu = jnp.mean(x, axis=-1, keepdims=True)
    var = jnp.mean(jnp.square(x - mu), axis=-1, keepdims=True)
    return (x - mu) * jax.lax.rsqrt(var + LN_EPS) * gamma + beta


# ---- Pallas kernel (single invocation, whole batch) --------------------------
def _cross_modal_kernel(
        img_ref, pos_ref, word_ref, bias_w_ref, bias_i_ref,
        w_img_ref, w_pos_ref, b_img_ref,
        w_kv_ref, b_kv_ref,
        tv_w_ref, m_kv_ref, segm_w_ref,
        w_p12_ref, b_p12_ref,
        w_qk3_ref, b_qk3_ref,
        tv3_ref, m_v3_ref, segm_i_ref,
        w_out3_ref, b_out3_ref,
        ln_g_ref, ln_b_ref, scale_ref,
        out_ref):
    f32 = jnp.float32
    bf16 = jnp.bfloat16
    D = img_ref.shape[1]

    img = img_ref[...]                                            # (Nq, D) f32
    img_b = img.astype(bf16)

    # ---- fused img-side projections: [Q1 | Q2 | V3 | img_embed] (Q pre-scaled)
    iq = (jnp.dot(img_b, w_img_ref[...], preferred_element_type=f32)
          + jnp.dot(pos_ref[...].astype(bf16), w_pos_ref[...],
                    preferred_element_type=f32)
          + b_img_ref[...])                                       # (Nq, 4D)
    q12 = iq[:, :2 * D]                                           # (Nq, 2D)
    v3 = iq[:, 2 * D:3 * D]                                       # (Nq, D)
    img_embed = iq[:, 3 * D:]                                     # (Nq, D)

    # ---- fused word-side projections: [K1 | K2 | V1 | V2]
    kv = (jnp.dot(word_ref[...].astype(bf16), w_kv_ref[...],
                  preferred_element_type=f32) + b_kv_ref[...])    # (Nk, 4D)

    # ---- block-diagonal key/value slabs for fused attn1+attn2 (8 head-groups):
    #      kvrep[c, f] = kv[c % Nk, f] * (c // Nk == (f % 2D) // hd)
    kvrep = (jnp.dot(tv_w_ref[...], kv.astype(bf16),
                     preferred_element_type=f32) * m_kv_ref[...]) # (128, 4D)
    krep = kvrep[:, :2 * D].astype(bf16)                          # (128, 2D)
    vbig = kvrep[:, 2 * D:].astype(bf16)                          # (128, 2D)

    # ---- attn1 + attn2 (img -> word): one lane-dense (Nq, 128) score slab
    s = (jnp.einsum('qf,cf->qc', q12.astype(bf16), krep,
                    preferred_element_type=f32) + bias_w_ref[...])
    m = jnp.max(s, axis=-1, keepdims=True)                        # shared shift; softmax
    e = jnp.exp(s - m)                                            # is per-segment anyway
    den = jnp.dot(e, segm_w_ref[...], preferred_element_type=f32) # per-segment sums
    p = e * pl.reciprocal(den, approx=True)
    o12 = jnp.dot(p.astype(bf16), vbig, preferred_element_type=f32)   # (Nq, 2D), heads merged

    # ---- fused (block-diagonal) output projections: [text_proj(out1(.)) | out2(.)]
    p12 = (jnp.dot(o12.astype(bf16), w_p12_ref[...],
                   preferred_element_type=f32) + b_p12_ref[...])  # (Nq, 2D)
    text_embed = p12[:, :D]
    tgvi = p12[:, D:]

    # ---- fusion score: exp(-scale * L1_normalize(img_embed - text_embed))
    diff = img_embed - text_embed
    den1 = jnp.maximum(jnp.sum(jnp.abs(diff), axis=-1, keepdims=True), 1e-12)
    distance = diff * pl.reciprocal(den1, approx=False)           # exact reciprocal here
    fusion_score = jnp.exp(-scale_ref[0] * distance)

    # ---- img2img attention: q = k = img + tgvi, value = img (V3 already in iq)
    x3 = img + tgvi
    qk3 = (jnp.dot(x3.astype(bf16), w_qk3_ref[...],
                   preferred_element_type=f32) + b_qk3_ref[...])  # (Nq, 2D) = [Q3 | K3]
    q3 = qk3[:, :D]
    k3 = qk3[:, D:]
    k3rep = (jnp.dot(tv3_ref[...], k3.astype(bf16),
                     preferred_element_type=f32) * m_v3_ref[...]).astype(bf16)  # (128, D)
    v3big = (jnp.dot(tv3_ref[...], v3.astype(bf16),
                     preferred_element_type=f32) * m_v3_ref[...]).astype(bf16)  # (128, D)
    s3 = (jnp.einsum('qf,cf->qc', q3.astype(bf16), k3rep,
                     preferred_element_type=f32) + bias_i_ref[...])
    m3 = jnp.max(s3, axis=-1, keepdims=True)
    e3 = jnp.exp(s3 - m3)
    den3 = jnp.dot(e3, segm_i_ref[...], preferred_element_type=f32)
    p3 = e3 * pl.reciprocal(den3, approx=True)
    o3 = jnp.dot(p3.astype(bf16), v3big, preferred_element_type=f32)   # (Nq, D)
    mod = (jnp.dot(o3.astype(bf16), w_out3_ref[...],
                   preferred_element_type=f32) + b_out3_ref[...])

    # ---- LayerNorms + fusion gate; only the fused half is written by the kernel
    lng = ln_g_ref[...]
    lnb = ln_b_ref[...]
    fuse = (_layernorm(img, lng[0:1], lnb[0:1]) +
            _layernorm(mod, lng[1:2], lnb[1:2])) * fusion_score
    out_ref[...] = fuse.astype(out_ref.dtype)


# ---- parameter packing (runs ONCE, outside the per-call hot path) -------------
def pack_params(params):
    (w_in_all, b_in_all, w_out_all, b_out_all,
     w_proj, b_proj, ln_g, ln_b, scale) = params
    f32, bf16 = jnp.float32, jnp.bfloat16
    D, H, hd = D_MODEL, NUM_HEADS, HEAD_DIM
    B, Li, Lw = BATCH, L_IMG, L_WORD
    sc = 1.0 / math.sqrt(hd)                      # softmax scale folded into Q weights

    def qkv(i):
        w, b = w_in_all[i], b_in_all[i]
        return w[:, :D], w[:, D:2 * D], w[:, 2 * D:], b[:D], b[D:2 * D], b[2 * D:]

    wq1, wk1, wv1, bq1, bk1, bv1 = qkv(0)
    wq2, wk2, wv2, bq2, bk2, bv2 = qkv(1)
    wq3, wk3, wv3, bq3, bk3, bv3 = qkv(2)

    # img-side fused projection -> [Q1 | Q2 | V3 | img_embed]
    w_img = jnp.concatenate([wq1 * sc, wq2 * sc, wv3, w_proj[1]], axis=1)
    w_pos = jnp.concatenate([wq1 * sc, jnp.zeros((D, 3 * D), f32)], axis=1)
    b_img = jnp.concatenate([bq1 * sc, bq2 * sc, bv3, b_proj[1]])[None, :]

    # word-side fused projection -> [K1 | K2 | V1 | V2]
    w_kv = jnp.concatenate([wk1, wk2, wv1, wv2], axis=1)
    b_kv = jnp.concatenate([bk1, bk2, bv1, bv2])[None, :]

    # attn1.out_proj folded into text_proj; block-diagonal with attn2.out_proj
    w_o1t = w_out_all[0] @ w_proj[0]
    b_o1t = b_out_all[0] @ w_proj[0] + b_proj[0]
    z = jnp.zeros((D, D), f32)
    w_p12 = jnp.concatenate([jnp.concatenate([w_o1t, z], axis=1),
                             jnp.concatenate([z, w_out_all[1]], axis=1)], axis=0)
    b_p12 = jnp.concatenate([b_o1t, b_out_all[1]])[None, :]

    # img2img fused [Q3 | K3] (Q3 pre-scaled) and its output projection
    w_qk3 = jnp.concatenate([wq3 * sc, wk3], axis=1)
    b_qk3 = jnp.concatenate([bq3 * sc, bk3])[None, :]
    w_out3 = w_out_all[2]
    b_out3 = b_out_all[2][None, :]

    # shape-only 0/1 tiling / block-diagonal / segment matrices (used on the idle MXU)
    nq, nkw = B * Li, B * Lw
    g12, g3 = 2 * H, H
    wd12, wd3 = g12 * nkw, g3 * nq                # score lane widths (=128 here)

    tv_w = (jnp.arange(wd12)[:, None] % nkw == jnp.arange(nkw)[None, :]).astype(bf16)
    m_kv = (jnp.arange(wd12)[:, None] // nkw
            == (jnp.arange(4 * D)[None, :] % (2 * D)) // hd).astype(f32)
    segm_w = (jnp.arange(wd12)[:, None] // nkw
              == jnp.arange(wd12)[None, :] // nkw).astype(f32)
    tv3 = (jnp.arange(wd3)[:, None] % nq == jnp.arange(nq)[None, :]).astype(bf16)
    m_v3 = (jnp.arange(wd3)[:, None] // nq
            == jnp.arange(D)[None, :] // hd).astype(f32)
    segm_i = (jnp.arange(wd3)[:, None] // nq
              == jnp.arange(wd3)[None, :] // nq).astype(f32)

    return (w_img.astype(bf16), w_pos.astype(bf16), b_img.astype(f32),
            w_kv.astype(bf16), b_kv.astype(f32),
            tv_w, m_kv, segm_w,
            w_p12.astype(bf16), b_p12.astype(f32),
            w_qk3.astype(bf16), b_qk3.astype(f32),
            tv3, m_v3, segm_i,
            w_out3.astype(bf16), b_out3.astype(f32),
            ln_g.astype(f32), ln_b.astype(f32),
            scale.reshape((1,)).astype(f32))


# ---- per-call wrapper: mask -> bias plumbing + pallas_call --------------------
@jax.jit
def cross_modal_encoder(img_feat, img_pos, word_feat, word_mask, img_mask, packed):
    f32 = jnp.float32
    B, Li, D = img_feat.shape
    Lw = word_feat.shape[1]
    H = NUM_HEADS

    img = img_feat.reshape(B * Li, D)
    pos = img_pos.reshape(B * Li, D)
    word = word_feat.reshape(B * Lw, D)

    # key-padding + cross-batch masks -> additive score biases, tiled per head-group
    qb = jnp.repeat(jnp.arange(B), Li)
    kbw = jnp.repeat(jnp.arange(B), Lw)
    wpad = word_mask.reshape(B * Lw) > 0.5
    ipad = img_mask.reshape(B * Li) > 0.5
    base_w = jnp.where((qb[:, None] != kbw[None, :]) | wpad[None, :],
                       NEG_BIG, 0.0).astype(f32)                  # (B*Li, B*Lw)
    base_i = jnp.where((qb[:, None] != qb[None, :]) | ipad[None, :],
                       NEG_BIG, 0.0).astype(f32)                  # (B*Li, B*Li)
    bias_w = jnp.tile(base_w, (1, 2 * H))                         # (32, 128)
    bias_i = jnp.tile(base_i, (1, H))                             # (32, 128)

    vmem = pl.BlockSpec(memory_space=pltpu.MemorySpace.VMEM)
    smem = pl.BlockSpec(memory_space=pltpu.MemorySpace.SMEM)

    fuse = pl.pallas_call(
        _cross_modal_kernel,
        out_shape=jax.ShapeDtypeStruct((B * Li, D), f32),
        in_specs=[vmem] * 24 + [smem],
        out_specs=vmem,
    )(img, pos, word, bias_w, bias_i, *packed)

    # pass-through half of the output is concatenated outside the kernel
    return jnp.concatenate([img_feat, fuse.reshape(B, Li, D)], axis=-1)


# ---- pure-JAX reference (original, unfused math) -----------------------------
def _mha_ref(q_in, k_in, v_in, mask, w_in, b_in, w_out, b_out):
    d = D_MODEL
    q = q_in @ w_in[:, :d] + b_in[:d]
    k = k_in @ w_in[:, d:2 * d] + b_in[d:2 * d]
    v = v_in @ w_in[:, 2 * d:] + b_in[2 * d:]
    heads = []
    for h in range(NUM_HEADS):
        sl = slice(h * HEAD_DIM, (h + 1) * HEAD_DIM)
        s = (q[:, sl] @ k[:, sl].T) / math.sqrt(HEAD_DIM) + mask * NEG_BIG
        m = jnp.max(s, axis=-1, keepdims=True)
        e = jnp.exp(s - m)
        p = e / jnp.sum(e, axis=-1, keepdims=True)
        heads.append(p @ v[:, sl])
    return jnp.concatenate(heads, axis=-1) @ w_out + b_out


def _layer_ref(img, pos, word, wmask, imask,
               w_in_all, b_in_all, w_out_all, b_out_all,
               w_proj, b_proj, ln_g, ln_b, scale):
    text_info = _mha_ref(img + pos, word, word, wmask,
                         w_in_all[0], b_in_all[0], w_out_all[0], b_out_all[0])
    text_embed = text_info @ w_proj[0] + b_proj[0]
    img_embed = img @ w_proj[1] + b_proj[1]
    diff = img_embed - text_embed
    denom = jnp.maximum(jnp.sum(jnp.abs(diff), axis=-1, keepdims=True), 1e-12)
    fusion_score = jnp.exp(-scale[0, 0] * (diff / denom))
    tgvi = _mha_ref(img, word, word, wmask,
                    w_in_all[1], b_in_all[1], w_out_all[1], b_out_all[1])
    qk = img + tgvi
    mod = _mha_ref(qk, qk, img, imask,
                   w_in_all[2], b_in_all[2], w_out_all[2], b_out_all[2])
    fuse = (_layernorm(img, ln_g[0:1], ln_b[0:1]) +
            _layernorm(mod, ln_g[1:2], ln_b[1:2])) * fusion_score
    return jnp.concatenate([img, fuse], axis=-1)


# ---- driver ------------------------------------------------------------------
if __name__ == "__main__":
    key = jax.random.PRNGKey(0)
    keys = jax.random.split(key, 12)

    # deterministic synthetic parameters (shapes follow the module's __init__)
    w_in_all = 0.1 * jax.random.normal(keys[0], (3, D_MODEL, 3 * D_MODEL), jnp.float32)
    b_in_all = 0.1 * jax.random.normal(keys[1], (3, 3 * D_MODEL), jnp.float32)
    w_out_all = 0.1 * jax.random.normal(keys[2], (3, D_MODEL, D_MODEL), jnp.float32)
    b_out_all = 0.1 * jax.random.normal(keys[3], (3, D_MODEL), jnp.float32)
    w_proj = 0.1 * jax.random.normal(keys[4], (2, D_MODEL, D_MODEL), jnp.float32)   # text_proj, img_proj
    b_proj = 0.1 * jax.random.normal(keys[5], (2, D_MODEL), jnp.float32)
    ln_g = 1.0 + 0.05 * jax.random.normal(keys[6], (2, D_MODEL), jnp.float32)       # norm_img, norm_modulated_img
    ln_b = 0.05 * jax.random.normal(keys[7], (2, D_MODEL), jnp.float32)
    scale = jnp.full((1, 1), 1.0, jnp.float32)                                      # fusion_args['scale']
    params = (w_in_all, b_in_all, w_out_all, b_out_all, w_proj, b_proj, ln_g, ln_b, scale)

    # weight packing is hoisted out of the per-call path: done exactly once
    packed = pack_params(params)
    packed = jax.tree_util.tree_map(jax.block_until_ready, packed)

    # inputs
    img_feat = jax.random.normal(keys[8], (BATCH, L_IMG, D_MODEL), jnp.float32)
    img_pos = jax.random.normal(keys[9], (BATCH, L_IMG, D_MODEL), jnp.float32)
    word_feat = jax.random.normal(keys[10], (BATCH, L_WORD, D_MODEL), jnp.float32)
    # key-padding masks (1.0 = ignore); second batch element has 3 padded words
    word_lens = jnp.array([L_WORD, L_WORD - 3])
    word_mask = (jnp.arange(L_WORD)[None, :] >= word_lens[:, None]).astype(jnp.float32)[:, None, :]
    img_mask = jnp.zeros((BATCH, 1, L_IMG), jnp.float32)

    out = cross_modal_encoder(img_feat, img_pos, word_feat, word_mask, img_mask, packed)
    out = jax.block_until_ready(out)

    # pure-JAX reference (original math, vmapped over batch)
    ref_fn = jax.vmap(_layer_ref, in_axes=(0, 0, 0, 0, 0) + (None,) * 9)
    ref = ref_fn(img_feat, img_pos, word_feat, word_mask, img_mask, *params)
    np.testing.assert_allclose(np.asarray(out), np.asarray(ref), rtol=5e-2, atol=5e-2)
    assert out.shape == (BATCH, L_IMG, 2 * D_MODEL)
    assert bool(jnp.all(jnp.isfinite(out)))

    print("KERNEL_OK")
</pallas_src>

<mosaic_0001>
module attributes {stable_mosaic.version = 11 : i64} {
  func.func @_cross_modal_kernel(%arg0: memref<32x32xf32, #tpu.memory_space<vmem>>, %arg1: memref<32x32xf32, #tpu.memory_space<vmem>>, %arg2: memref<16x32xf32, #tpu.memory_space<vmem>>, %arg3: memref<32x128xf32, #tpu.memory_space<vmem>>, %arg4: memref<32x128xf32, #tpu.memory_space<vmem>>, %arg5: memref<32x128xbf16, #tpu.memory_space<vmem>>, %arg6: memref<32x128xbf16, #tpu.memory_space<vmem>>, %arg7: memref<1x128xf32, #tpu.memory_space<vmem>>, %arg8: memref<32x128xbf16, #tpu.memory_space<vmem>>, %arg9: memref<1x128xf32, #tpu.memory_space<vmem>>, %arg10: memref<128x16xbf16, #tpu.memory_space<vmem>>, %arg11: memref<128x128xf32, #tpu.memory_space<vmem>>, %arg12: memref<128x128xf32, #tpu.memory_space<vmem>>, %arg13: memref<64x64xbf16, #tpu.memory_space<vmem>>, %arg14: memref<1x64xf32, #tpu.memory_space<vmem>>, %arg15: memref<32x64xbf16, #tpu.memory_space<vmem>>, %arg16: memref<1x64xf32, #tpu.memory_space<vmem>>, %arg17: memref<128x32xbf16, #tpu.memory_space<vmem>>, %arg18: memref<128x32xf32, #tpu.memory_space<vmem>>, %arg19: memref<128x128xf32, #tpu.memory_space<vmem>>, %arg20: memref<32x32xbf16, #tpu.memory_space<vmem>>, %arg21: memref<1x32xf32, #tpu.memory_space<vmem>>, %arg22: memref<2x32xf32, #tpu.memory_space<vmem>>, %arg23: memref<2x32xf32, #tpu.memory_space<vmem>>, %arg24: memref<1xf32, #tpu.memory_space<smem>>, %arg25: memref<32x32xf32, #tpu.memory_space<vmem>>) attributes {dimension_semantics = [], scalar_prefetch = 0 : i64, scratch_operands = 0 : i64, tpu.core_type = #tpu.core_type<tc>} {
    %c0 = arith.constant 0 : index
    %c0_0 = arith.constant 0 : index
    %0 = vector.load %arg0[%c0, %c0_0] : memref<32x32xf32, #tpu.memory_space<vmem>>, vector<32x32xf32>
    %1 = arith.truncf %0 : vector<32x32xf32> to vector<32x32xbf16>
    %c0_1 = arith.constant 0 : index
    %c0_2 = arith.constant 0 : index
    %2 = vector.load %arg5[%c0_1, %c0_2] : memref<32x128xbf16, #tpu.memory_space<vmem>>, vector<32x128xbf16>
    %cst = arith.constant dense<0.000000e+00> : vector<32x128xf32>
    %3 = tpu.matmul %1, %2, %cst {dimension_numbers = #tpu.dot_dimension_numbers<[1], [0], [0], [1], [0, 0, 1, 1], [], []>} : vector<32x32xbf16>, vector<32x128xbf16>, vector<32x128xf32> -> vector<32x128xf32>
    %c0_3 = arith.constant 0 : index
    %c0_4 = arith.constant 0 : index
    %4 = vector.load %arg1[%c0_3, %c0_4] : memref<32x32xf32, #tpu.memory_space<vmem>>, vector<32x32xf32>
    %5 = arith.truncf %4 : vector<32x32xf32> to vector<32x32xbf16>
    %c0_5 = arith.constant 0 : index
    %c0_6 = arith.constant 0 : index
    %6 = vector.load %arg6[%c0_5, %c0_6] : memref<32x128xbf16, #tpu.memory_space<vmem>>, vector<32x128xbf16>
    %cst_7 = arith.constant dense<0.000000e+00> : vector<32x128xf32>
    %7 = tpu.matmul %5, %6, %cst_7 {dimension_numbers = #tpu.dot_dimension_numbers<[1], [0], [0], [1], [0, 0, 1, 1], [], []>} : vector<32x32xbf16>, vector<32x128xbf16>, vector<32x128xf32> -> vector<32x128xf32>
    %8 = arith.addf %3, %7 : vector<32x128xf32>
    %c0_8 = arith.constant 0 : index
    %c0_9 = arith.constant 0 : index
    %9 = vector.load %arg7[%c0_8, %c0_9] : memref<1x128xf32, #tpu.memory_space<vmem>>, vector<1x128xf32>
    %10 = vector.broadcast %9 : vector<1x128xf32> to vector<32x128xf32>
    %11 = arith.addf %8, %10 : vector<32x128xf32>
    %12 = vector.extract_strided_slice %11 {offsets = [0, 0], sizes = [32, 64], strides = [1, 1]} : vector<32x128xf32> to vector<32x64xf32>
    %13 = vector.extract_strided_slice %11 {offsets = [0, 64], sizes = [32, 32], strides = [1, 1]} : vector<32x128xf32> to vector<32x32xf32>
    %14 = vector.extract_strided_slice %11 {offsets = [0, 96], sizes = [32, 32], strides = [1, 1]} : vector<32x128xf32> to vector<32x32xf32>
    %c0_10 = arith.constant 0 : index
    %c0_11 = arith.constant 0 : index
    %15 = vector.load %arg2[%c0_10, %c0_11] : memref<16x32xf32, #tpu.memory_space<vmem>>, vector<16x32xf32>
    %16 = arith.truncf %15 : vector<16x32xf32> to vector<16x32xbf16>
    %c0_12 = arith.constant 0 : index
    %c0_13 = arith.constant 0 : index
    %17 = vector.load %arg8[%c0_12, %c0_13] : memref<32x128xbf16, #tpu.memory_space<vmem>>, vector<32x128xbf16>
    %cst_14 = arith.constant dense<0.000000e+00> : vector<16x128xf32>
    %18 = tpu.matmul %16, %17, %cst_14 {dimension_numbers = #tpu.dot_dimension_numbers<[1], [0], [0], [1], [0, 0, 1, 1], [], []>} : vector<16x32xbf16>, vector<32x128xbf16>, vector<16x128xf32> -> vector<16x128xf32>
    %c0_15 = arith.constant 0 : index
    %c0_16 = arith.constant 0 : index
    %19 = vector.load %arg9[%c0_15, %c0_16] : memref<1x128xf32, #tpu.memory_space<vmem>>, vector<1x128xf32>
    %20 = vector.broadcast %19 : vector<1x128xf32> to vector<16x128xf32>
    %21 = arith.addf %18, %20 : vector<16x128xf32>
    %c0_17 = arith.constant 0 : index
    %c0_18 = arith.constant 0 : index
    %22 = vector.load %arg10[%c0_17, %c0_18] : memref<128x16xbf16, #tpu.memory_space<vmem>>, vector<128x16xbf16>
    %23 = arith.truncf %21 : vector<16x128xf32> to vector<16x128xbf16>
    %cst_19 = arith.constant dense<0.000000e+00> : vector<128x128xf32>
    %24 = tpu.matmul %22, %23, %cst_19 {dimension_numbers = #tpu.dot_dimension_numbers<[1], [0], [0], [1], [0, 0, 1, 1], [], []>} : vector<128x16xbf16>, vector<16x128xbf16>, vector<128x128xf32> -> vector<128x128xf32>
    %c0_20 = arith.constant 0 : index
    %c0_21 = arith.constant 0 : index
    %25 = vector.load %arg11[%c0_20, %c0_21] : memref<128x128xf32, #tpu.memory_space<vmem>>, vector<128x128xf32>
    %26 = arith.mulf %24, %25 : vector<128x128xf32>
    %27 = vector.extract_strided_slice %26 {offsets = [0, 0], sizes = [128, 64], strides = [1, 1]} : vector<128x128xf32> to vector<128x64xf32>
    %28 = arith.truncf %27 : vector<128x64xf32> to vector<128x64xbf16>
    %29 = vector.extract_strided_slice %26 {offsets = [0, 64], sizes = [128, 64], strides = [1, 1]} : vector<128x128xf32> to vector<128x64xf32>
    %30 = arith.truncf %29 : vector<128x64xf32> to vector<128x64xbf16>
    %31 = arith.truncf %12 : vector<32x64xf32> to vector<32x64xbf16>
    "tpu.trace_start"() <{level = 10 : i32, message = "qf,cf->qc"}> : () -> ()
    %cst_22 = arith.constant dense<0.000000e+00> : vector<32x128xf32>
    %32 = tpu.matmul %31, %28, %cst_22 {dimension_numbers = #tpu.dot_dimension_numbers<[1], [1], [0], [0], [0, 0, 1, 0], [], []>} : vector<32x64xbf16>, vector<128x64xbf16>, vector<32x128xf32> -> vector<32x128xf32>
    "tpu.trace_stop"() : () -> ()
    %c0_23 = arith.constant 0 : index
    %c0_24 = arith.constant 0 : index
    %33 = vector.load %arg3[%c0_23, %c0_24] : memref<32x128xf32, #tpu.memory_space<vmem>>, vector<32x128xf32>
    %34 = arith.addf %32, %33 : vector<32x128xf32>
    %cst_25 = arith.constant dense<0xFF800000> : vector<32xf32>
    %35 = vector.multi_reduction <maximumf>, %34, %cst_25 [1] : vector<32x128xf32> to vector<32xf32>
    %36 = vector.shape_cast %35 : vector<32xf32> to vector<32x1xf32>
    %37 = vector.broadcast %36 : vector<32x1xf32> to vector<32x128xf32>
    %38 = arith.subf %34, %37 : vector<32x128xf32>
    %39 = math.exp %38 : vector<32x128xf32>
    %c0_26 = arith.constant 0 : index
    %c0_27 = arith.constant 0 : index
    %40 = vector.load %arg12[%c0_26, %c0_27] : memref<128x128xf32, #tpu.memory_space<vmem>>, vector<128x128xf32>
    %cst_28 = arith.constant dense<0.000000e+00> : vector<32x128xf32>
    %41 = tpu.matmul %39, %40, %cst_28 {dimension_numbers = #tpu.dot_dimension_numbers<[1], [0], [0], [1], [0, 0, 1, 1], [], []>} : vector<32x128xf32>, vector<128x128xf32>, vector<32x128xf32> -> vector<32x128xf32>
    %42 = tpu.reciprocal %41 {approx = true} : vector<32x128xf32> -> vector<32x128xf32>
    %43 = arith.mulf %39, %42 : vector<32x128xf32>
    %44 = arith.truncf %43 : vector<32x128xf32> to vector<32x128xbf16>
    %cst_29 = arith.constant dense<0.000000e+00> : vector<32x64xf32>
    %45 = tpu.matmul %44, %30, %cst_29 {dimension_numbers = #tpu.dot_dimension_numbers<[1], [0], [0], [1], [0, 0, 1, 1], [], []>} : vector<32x128xbf16>, vector<128x64xbf16>, vector<32x64xf32> -> vector<32x64xf32>
    %46 = arith.truncf %45 : vector<32x64xf32> to vector<32x64xbf16>
    %c0_30 = arith.constant 0 : index
    %c0_31 = arith.constant 0 : index
    %47 = vector.load %arg13[%c0_30, %c0_31] : memref<64x64xbf16, #tpu.memory_space<vmem>>, vector<64x64xbf16>
    %cst_32 = arith.constant dense<0.000000e+00> : vector<32x64xf32>
    %48 = tpu.matmul %46, %47, %cst_32 {dimension_numbers = #tpu.dot_dimension_numbers<[1], [0], [0], [1], [0, 0, 1, 1], [], []>} : vector<32x64xbf16>, vector<64x64xbf16>, vector<32x64xf32> -> vector<32x64xf32>
    %c0_33 = arith.constant 0 : index
    %c0_34 = arith.constant 0 : index
    %49 = vector.load %arg14[%c0_33, %c0_34] : memref<1x64xf32, #tpu.memory_space<vmem>>, vector<1x64xf32>
    %50 = vector.broadcast %49 : vector<1x64xf32> to vector<32x64xf32>
    %51 = arith.addf %48, %50 : vector<32x64xf32>
    %52 = vector.extract_strided_slice %51 {offsets = [0, 0], sizes = [32, 32], strides = [1, 1]} : vector<32x64xf32> to vector<32x32xf32>
    %53 = vector.extract_strided_slice %51 {offsets = [0, 32], sizes = [32, 32], strides = [1, 1]} : vector<32x64xf32> to vector<32x32xf32>
    %54 = arith.subf %14, %52 : vector<32x32xf32>
    %55 = math.absf %54 : vector<32x32xf32>
    %cst_35 = arith.constant dense<0.000000e+00> : vector<32xf32>
    %56 = vector.multi_reduction <add>, %55, %cst_35 [1] : vector<32x32xf32> to vector<32xf32>
    %57 = vector.shape_cast %56 : vector<32xf32> to vector<32x1xf32>
    %cst_36 = arith.constant 9.99999996E-13 : f32
    %58 = vector.broadcast %cst_36 : f32 to vector<32x1xf32>
    %59 = arith.maximumf %57, %58 : vector<32x1xf32>
    %60 = tpu.reciprocal %59 : vector<32x1xf32> -> vector<32x1xf32>
    %61 = vector.broadcast %60 : vector<32x1xf32> to vector<32x32xf32>
    %62 = arith.mulf %54, %61 : vector<32x32xf32>
    %c0_37 = arith.constant 0 : index
    %63 = memref.load %arg24[%c0_37] : memref<1xf32, #tpu.memory_space<smem>>
    %cst_38 = arith.constant 0.000000e+00 : f32
    %64 = arith.subf %cst_38, %63 : f32
    %65 = vector.broadcast %64 : f32 to vector<32x32xf32>
    %66 = arith.mulf %65, %62 : vector<32x32xf32>
    %67 = math.exp %66 : vector<32x32xf32>
    %68 = arith.addf %0, %53 : vector<32x32xf32>
    %69 = arith.truncf %68 : vector<32x32xf32> to vector<32x32xbf16>
    %c0_39 = arith.constant 0 : index
    %c0_40 = arith.constant 0 : index
    %70 = vector.load %arg15[%c0_39, %c0_40] : memref<32x64xbf16, #tpu.memory_space<vmem>>, vector<32x64xbf16>
    %cst_41 = arith.constant dense<0.000000e+00> : vector<32x64xf32>
    %71 = tpu.matmul %69, %70, %cst_41 {dimension_numbers = #tpu.dot_dimension_numbers<[1], [0], [0], [1], [0, 0, 1, 1], [], []>} : vector<32x32xbf16>, vector<32x64xbf16>, vector<32x64xf32> -> vector<32x64xf32>
    %c0_42 = arith.constant 0 : index
    %c0_43 = arith.constant 0 : index
    %72 = vector.load %arg16[%c0_42, %c0_43] : memref<1x64xf32, #tpu.memory_space<vmem>>, vector<1x64xf32>
    %73 = vector.broadcast %72 : vector<1x64xf32> to vector<32x64xf32>
    %74 = arith.addf %71, %73 : vector<32x64xf32>
    %75 = vector.extract_strided_slice %74 {offsets = [0, 0], sizes = [32, 32], strides = [1, 1]} : vector<32x64xf32> to vector<32x32xf32>
    %76 = vector.extract_strided_slice %74 {offsets = [0, 32], sizes = [32, 32], strides = [1, 1]} : vector<32x64xf32> to vector<32x32xf32>
    %c0_44 = arith.constant 0 : index
    %c0_45 = arith.constant 0 : index
    %77 = vector.load %arg17[%c0_44, %c0_45] : memref<128x32xbf16, #tpu.memory_space<vmem>>, vector<128x32xbf16>
    %78 = arith.truncf %76 : vector<32x32xf32> to vector<32x32xbf16>
    %cst_46 = arith.constant dense<0.000000e+00> : vector<128x32xf32>
    %79 = tpu.matmul %77, %78, %cst_46 {dimension_numbers = #tpu.dot_dimension_numbers<[1], [0], [0], [1], [0, 0, 1, 1], [], []>} : vector<128x32xbf16>, vector<32x32xbf16>, vector<128x32xf32> -> vector<128x32xf32>
    %c0_47 = arith.constant 0 : index
    %c0_48 = arith.constant 0 : index
    %80 = vector.load %arg18[%c0_47, %c0_48] : memref<128x32xf32, #tpu.memory_space<vmem>>, vector<128x32xf32>
    %81 = arith.mulf %79, %80 : vector<128x32xf32>
    %82 = arith.truncf %81 : vector<128x32xf32> to vector<128x32xbf16>
    %c0_49 = arith.constant 0 : index
    %c0_50 = arith.constant 0 : index
    %83 = vector.load %arg17[%c0_49, %c0_50] : memref<128x32xbf16, #tpu.memory_space<vmem>>, vector<128x32xbf16>
    %84 = arith.truncf %13 : vector<32x32xf32> to vector<32x32xbf16>
    %cst_51 = arith.constant dense<0.000000e+00> : vector<128x32xf32>
    %85 = tpu.matmul %83, %84, %cst_51 {dimension_numbers = #tpu.dot_dimension_numbers<[1], [0], [0], [1], [0, 0, 1, 1], [], []>} : vector<128x32xbf16>, vector<32x32xbf16>, vector<128x32xf32> -> vector<128x32xf32>
    %c0_52 = arith.constant 0 : index
    %c0_53 = arith.constant 0 : index
    %86 = vector.load %arg18[%c0_52, %c0_53] : memref<128x32xf32, #tpu.memory_space<vmem>>, vector<128x32xf32>
    %87 = arith.mulf %85, %86 : vector<128x32xf32>
    %88 = arith.truncf %87 : vector<128x32xf32> to vector<128x32xbf16>
    %89 = arith.truncf %75 : vector<32x32xf32> to vector<32x32xbf16>
    "tpu.trace_start"() <{level = 10 : i32, message = "qf,cf->qc"}> : () -> ()
    %cst_54 = arith.constant dense<0.000000e+00> : vector<32x128xf32>
    %90 = tpu.matmul %89, %82, %cst_54 {dimension_numbers = #tpu.dot_dimension_numbers<[1], [1], [0], [0], [0, 0, 1, 0], [], []>} : vector<32x32xbf16>, vector<128x32xbf16>, vector<32x128xf32> -> vector<32x128xf32>
    "tpu.trace_stop"() : () -> ()
    %c0_55 = arith.constant 0 : index
    %c0_56 = arith.constant 0 : index
    %91 = vector.load %arg4[%c0_55, %c0_56] : memref<32x128xf32, #tpu.memory_space<vmem>>, vector<32x128xf32>
    %92 = arith.addf %90, %91 : vector<32x128xf32>
    %cst_57 = arith.constant dense<0xFF800000> : vector<32xf32>
    %93 = vector.multi_reduction <maximumf>, %92, %cst_57 [1] : vector<32x128xf32> to vector<32xf32>
    %94 = vector.shape_cast %93 : vector<32xf32> to vector<32x1xf32>
    %95 = vector.broadcast %94 : vector<32x1xf32> to vector<32x128xf32>
    %96 = arith.subf %92, %95 : vector<32x128xf32>
    %97 = math.exp %96 : vector<32x128xf32>
    %c0_58 = arith.constant 0 : index
    %c0_59 = arith.constant 0 : index
    %98 = vector.load %arg19[%c0_58, %c0_59] : memref<128x128xf32, #tpu.memory_space<vmem>>, vector<128x128xf32>
    %cst_60 = arith.constant dense<0.000000e+00> : vector<32x128xf32>
    %99 = tpu.matmul %97, %98, %cst_60 {dimension_numbers = #tpu.dot_dimension_numbers<[1], [0], [0], [1], [0, 0, 1, 1], [], []>} : vector<32x128xf32>, vector<128x128xf32>, vector<32x128xf32> -> vector<32x128xf32>
    %100 = tpu.reciprocal %99 {approx = true} : vector<32x128xf32> -> vector<32x128xf32>
    %101 = arith.mulf %97, %100 : vector<32x128xf32>
    %102 = arith.truncf %101 : vector<32x128xf32> to vector<32x128xbf16>
    %cst_61 = arith.constant dense<0.000000e+00> : vector<32x32xf32>
    %103 = tpu.matmul %102, %88, %cst_61 {dimension_numbers = #tpu.dot_dimension_numbers<[1], [0], [0], [1], [0, 0, 1, 1], [], []>} : vector<32x128xbf16>, vector<128x32xbf16>, vector<32x32xf32> -> vector<32x32xf32>
    %104 = arith.truncf %103 : vector<32x32xf32> to vector<32x32xbf16>
    %c0_62 = arith.constant 0 : index
    %c0_63 = arith.constant 0 : index
    %105 = vector.load %arg20[%c0_62, %c0_63] : memref<32x32xbf16, #tpu.memory_space<vmem>>, vector<32x32xbf16>
    %cst_64 = arith.constant dense<0.000000e+00> : vector<32x32xf32>
    %106 = tpu.matmul %104, %105, %cst_64 {dimension_numbers = #tpu.dot_dimension_numbers<[1], [0], [0], [1], [0, 0, 1, 1], [], []>} : vector<32x32xbf16>, vector<32x32xbf16>, vector<32x32xf32> -> vector<32x32xf32>
    %c0_65 = arith.constant 0 : index
    %c0_66 = arith.constant 0 : index
    %107 = vector.load %arg21[%c0_65, %c0_66] : memref<1x32xf32, #tpu.memory_space<vmem>>, vector<1x32xf32>
    %108 = vector.broadcast %107 : vector<1x32xf32> to vector<32x32xf32>
    %109 = arith.addf %106, %108 : vector<32x32xf32>
    %c0_67 = arith.constant 0 : index
    %c0_68 = arith.constant 0 : index
    %110 = vector.load %arg22[%c0_67, %c0_68] : memref<2x32xf32, #tpu.memory_space<vmem>>, vector<2x32xf32>
    %c0_69 = arith.constant 0 : index
    %c0_70 = arith.constant 0 : index
    %111 = vector.load %arg23[%c0_69, %c0_70] : memref<2x32xf32, #tpu.memory_space<vmem>>, vector<2x32xf32>
    %112 = vector.extract_strided_slice %110 {offsets = [0, 0], sizes = [1, 32], strides = [1, 1]} : vector<2x32xf32> to vector<1x32xf32>
    %113 = vector.extract_strided_slice %111 {offsets = [0, 0], sizes = [1, 32], strides = [1, 1]} : vector<2x32xf32> to vector<1x32xf32>
    %cst_71 = arith.constant dense<0.000000e+00> : vector<32xf32>
    %114 = vector.multi_reduction <add>, %0, %cst_71 [1] : vector<32x32xf32> to vector<32xf32>
    %115 = vector.shape_cast %114 : vector<32xf32> to vector<32x1xf32>
    %cst_72 = arith.constant 3.200000e+01 : f32
    %116 = vector.broadcast %cst_72 : f32 to vector<32x1xf32>
    %117 = arith.divf %115, %116 : vector<32x1xf32>
    %118 = vector.broadcast %117 : vector<32x1xf32> to vector<32x32xf32>
    %119 = arith.subf %0, %118 : vector<32x32xf32>
    %120 = arith.mulf %119, %119 : vector<32x32xf32>
    %cst_73 = arith.constant dense<0.000000e+00> : vector<32xf32>
    %121 = vector.multi_reduction <add>, %120, %cst_73 [1] : vector<32x32xf32> to vector<32xf32>
    %122 = vector.shape_cast %121 : vector<32xf32> to vector<32x1xf32>
    %cst_74 = arith.constant 3.200000e+01 : f32
    %123 = vector.broadcast %cst_74 : f32 to vector<32x1xf32>
    %124 = arith.divf %122, %123 : vector<32x1xf32>
    %125 = vector.broadcast %117 : vector<32x1xf32> to vector<32x32xf32>
    %126 = arith.subf %0, %125 : vector<32x32xf32>
    %cst_75 = arith.constant 9.99999974E-6 : f32
    %127 = vector.broadcast %cst_75 : f32 to vector<32x1xf32>
    %128 = arith.addf %124, %127 : vector<32x1xf32>
    %129 = math.rsqrt %128 : vector<32x1xf32>
    %130 = vector.broadcast %129 : vector<32x1xf32> to vector<32x32xf32>
    %131 = arith.mulf %126, %130 : vector<32x32xf32>
    %132 = vector.broadcast %112 : vector<1x32xf32> to vector<32x32xf32>
    %133 = arith.mulf %131, %132 : vector<32x32xf32>
    %134 = vector.broadcast %113 : vector<1x32xf32> to vector<32x32xf32>
    %135 = arith.addf %133, %134 : vector<32x32xf32>
    %136 = vector.extract_strided_slice %110 {offsets = [1, 0], sizes = [1, 32], strides = [1, 1]} : vector<2x32xf32> to vector<1x32xf32>
    %137 = vector.extract_strided_slice %111 {offsets = [1, 0], sizes = [1, 32], strides = [1, 1]} : vector<2x32xf32> to vector<1x32xf32>
    %cst_76 = arith.constant dense<0.000000e+00> : vector<32xf32>
    %138 = vector.multi_reduction <add>, %109, %cst_76 [1] : vector<32x32xf32> to vector<32xf32>
    %139 = vector.shape_cast %138 : vector<32xf32> to vector<32x1xf32>
    %cst_77 = arith.constant 3.200000e+01 : f32
    %140 = vector.broadcast %cst_77 : f32 to vector<32x1xf32>
    %141 = arith.divf %139, %140 : vector<32x1xf32>
    %142 = vector.broadcast %141 : vector<32x1xf32> to vector<32x32xf32>
    %143 = arith.subf %109, %142 : vector<32x32xf32>
    %144 = arith.mulf %143, %143 : vector<32x32xf32>
    %cst_78 = arith.constant dense<0.000000e+00> : vector<32xf32>
    %145 = vector.multi_reduction <add>, %144, %cst_78 [1] : vector<32x32xf32> to vector<32xf32>
    %146 = vector.shape_cast %145 : vector<32xf32> to vector<32x1xf32>
    %cst_79 = arith.constant 3.200000e+01 : f32
    %147 = vector.broadcast %cst_79 : f32 to vector<32x1xf32>
    %148 = arith.divf %146, %147 : vector<32x1xf32>
    %149 = vector.broadcast %141 : vector<32x1xf32> to vector<32x32xf32>
    %150 = arith.subf %109, %149 : vector<32x32xf32>
    %cst_80 = arith.constant 9.99999974E-6 : f32
    %151 = vector.broadcast %cst_80 : f32 to vector<32x1xf32>
    %152 = arith.addf %148, %151 : vector<32x1xf32>
    %153 = math.rsqrt %152 : vector<32x1xf32>
    %154 = vector.broadcast %153 : vector<32x1xf32> to vector<32x32xf32>
    %155 = arith.mulf %150, %154 : vector<32x32xf32>
    %156 = vector.broadcast %136 : vector<1x32xf32> to vector<32x32xf32>
    %157 = arith.mulf %155, %156 : vector<32x32xf32>
    %158 = vector.broadcast %137 : vector<1x32xf32> to vector<32x32xf32>
    %159 = arith.addf %157, %158 : vector<32x32xf32>
    %160 = arith.addf %135, %159 : vector<32x32xf32>
    %161 = arith.mulf %160, %67 : vector<32x32xf32>
    %c0_81 = arith.constant 0 : index
    %c0_82 = arith.constant 0 : index
    %162 = vector.load %arg25[%c0_81, %c0_82] : memref<32x32xf32, #tpu.memory_space<vmem>>, vector<32x32xf32>
    tpu.vector_store %arg25[%c0_81, %c0_82], %161 {strides = array<i32>} : memref<32x32xf32, #tpu.memory_space<vmem>>, vector<32x32xf32>,
    return
  }
}

</mosaic_0001>

<bundles_post_ra>
// kernel: tile.19
= control target key start
LH: loop header
LB: loop body
LE: loop exit
PB: predicated region body
PF: predicated region fallthrough
CT: control target
= control target key end

     0   :  { %vm132_vm0 = vcmask 1047556   ;;  %s338_s15 = smov 96   ;;  %s339_s30 = smov 64   ;;  %vm134_vm1 = vcmask 261120   ;;  %vm171_vm2 = vcmask 1048320   ;;  %vm214_vm3 = vcmask 785920   ;;  %s535_s0 = inlined_call_operand.vmem [shape: f32[32,4,32], index: 0, kind: input, shape index: {}]   ;;  %s536_s1 = inlined_call_operand.vmem [shape: f32[32,128], index: 1, kind: output, shape index: {}]  }
   0x1   :  { %v316_v0 = vld [vmem:[%s535_s0 + $0x1c] sm:$0xf]  ;;  %v317_v1 = vld [vmem:[%s535_s0 + $0x18] sm:$0xf]  ;;  %v318_v2 = vld [vmem:[%s535_s0 + $0x14] sm:$0xf] }
   0x2   :  { %103 = vst [vmem:[#allocation0 + $0x38] sm:$0xf] %v316_v0  ;;  %v319_v3 = vld [vmem:[%s535_s0 + $0x10] sm:$0xf]  ;;  %v320_v4 = vld [vmem:[%s535_s0 + $0xc] sm:$0xf] }
   0x3   :  { %107 = vst [vmem:[#allocation0 + $0x30] sm:$0xf] %v317_v1  ;;  %v321_v5 = vld [vmem:[%s535_s0 + $0x8] sm:$0xf]  ;;  %v322_v6 = vld [vmem:[%s535_s0 + $0x4] sm:$0xf] }
   0x4   :  { %111 = vst [vmem:[#allocation0 + $0x28] sm:$0xf] %v318_v2  ;;  %v128_v7 = vld [vmem:[%s535_s0] sm:$0xf]  ;;  %v300_v8 = vld [vmem:[%s535_s0 + $0x5c] sm:$0xf] }
   0x5   :  { %115 = vst [vmem:[#allocation0 + $0x20] sm:$0xf] %v319_v3  ;;  %v301_v9 = vld [vmem:[%s535_s0 + $0x58] sm:$0xf]  ;;  %v302_v10 = vld [vmem:[%s535_s0 + $0x54] sm:$0xf] }
   0x6   :  { %119 = vst [vmem:[#allocation0 + $0x18] sm:$0xf] %v320_v4  ;;  %v303_v11 = vld [vmem:[%s535_s0 + $0x50] sm:$0xf]  ;;  %v304_v12 = vld [vmem:[%s535_s0 + $0x4c] sm:$0xf] }
   0x7   :  { %123 = vst [vmem:[#allocation0 + $0x10] sm:$0xf] %v321_v5  ;;  %v305_v13 = vld [vmem:[%s535_s0 + $0x48] sm:$0xf]  ;;  %v306_v14 = vld [vmem:[%s535_s0 + $0x44] sm:$0xf] }
   0x8   :  { %127 = vst [vmem:[#allocation0 + $0x8] sm:$0xf] %v322_v6  ;;  %v307_v15 = vld [vmem:[%s535_s0 + $0x40] sm:$0xf]  ;;  %v308_v17 = vld [vmem:[%s535_s0 + $0x3c] sm:$0xf] }
   0x9   :  { %129 = vst [vmem:[#allocation0] sm:$0xf] %v128_v7  ;;  %v309_v18 = vld [vmem:[%s535_s0 + $0x38] sm:$0xf]  ;;  %v310_v21 = vld [vmem:[%s535_s0 + $0x34] sm:$0xf] }
   0xa   :  { %39 = vst [vmem:[#allocation0 + $0xb8] sm:$0xf] %v300_v8  ;;  %v311_v22 = vld [vmem:[%s535_s0 + $0x30] sm:$0xf]  ;;  %v312_v23 = vld [vmem:[%s535_s0 + $0x2c] sm:$0xf] }
   0xb   :  { %43 = vst [vmem:[#allocation0 + $0xb0] sm:$0xf] %v301_v9  ;;  %v313_v24 = vld [vmem:[%s535_s0 + $0x28] sm:$0xf]  ;;  %v314_v25 = vld [vmem:[%s535_s0 + $0x24] sm:$0xf] }
   0xc   :  { %47 = vst [vmem:[#allocation0 + $0xa8] sm:$0xf] %v302_v10  ;;  %v166_v16 = vld [vmem:[#allocation0 + $0x3] ss:$8 sm:$0xf0]   ;;  %vm257_vm4 = vcmask 523520  }
   0xd   :  { %51 = vst [vmem:[#allocation0 + $0xa0] sm:$0xf] %v303_v11  ;;  %v315_v26 = vld [vmem:[%s535_s0 + $0x20] sm:$0xf]  ;;  %v292_v30 = vld [vmem:[%s535_s0 + $0x7c] sm:$0xf] }
   0xe   :  { %55 = vst [vmem:[#allocation0 + $0x98] sm:$0xf] %v304_v12  ;;  %v209_v29 = vld [vmem:[#allocation0 + $0x2] ss:$8 sm:$0xf0]  }
   0xf   :  { %59 = vst [vmem:[#allocation0 + $0x90] sm:$0xf] %v305_v13  ;;  %v293_v31 = vld [vmem:[%s535_s0 + $0x78] sm:$0xf]  ;;  %v294_v35 = vld [vmem:[%s535_s0 + $0x74] sm:$0xf] }
  0x10   :  { %v164_v19 = vld [vmem:[#allocation0 + $0x3] ss:$8 sm:$0xf]   ;;  %63 = vst [vmem:[#allocation0 + $0x88] sm:$0xf] %v306_v14 }
  0x11   :  { %v168_v20 = vsel %vm132_vm0, %v166_v16, %v164_v19  ;;  %67 = vst [vmem:[#allocation0 + $0x80] sm:$0xf] %v307_v15  ;;  %v207_v27 = vld [vmem:[#allocation0 + $0x2] ss:$8 sm:$0xf]  }
  0x12   :  { %169 = vrot.lane.b32.xlu0 %v168_v20, %s338_s15  ;;  %71 = vst [vmem:[#allocation0 + $0x78] sm:$0xf] %v308_v17  ;;  %v211_v32 = vsel %vm132_vm0, %v209_v29, %v207_v27  ;;  %v295_v36 = vld [vmem:[%s535_s0 + $0x70] sm:$0xf]  ;;  %v296_v37 = vld [vmem:[%s535_s0 + $0x6c] sm:$0xf] }
  0x13   :  { %75 = vst [vmem:[#allocation0 + $0x70] sm:$0xf] %v309_v18  ;;  %212 = vrot.lane.b32.xlu2 %v211_v32, %s339_s30  ;;  %v297_v38 = vld [vmem:[%s535_s0 + $0x68] sm:$0xf]  ;;  %v298_v39 = vld [vmem:[%s535_s0 + $0x64] sm:$0xf] }
  0x14   :  { %79 = vst [vmem:[#allocation0 + $0x68] sm:$0xf] %v310_v21  ;;  %v187_v28 = vld [vmem:[#allocation0 + $0x83] ss:$8 sm:$0xf0]  }
  0x15   :  { %83 = vst [vmem:[#allocation0 + $0x60] sm:$0xf] %v311_v22  ;;  %v299_v40 = vld [vmem:[%s535_s0 + $0x60] sm:$0xf]  ;;  %s340_s0 = smov 32  }
  0x16   :  { %87 = vst [vmem:[#allocation0 + $0x58] sm:$0xf] %v312_v23  ;;  %v230_v48 = vld [vmem:[#allocation0 + $0x82] ss:$8 sm:$0xf0]  }
  0x17   :  { %91 = vst [vmem:[#allocation0 + $0x50] sm:$0xf] %v313_v24  ;;  %v250_v49 = vld [vmem:[#allocation0 + $0x1] ss:$8 sm:$0xf]  }
  0x18   :  { %v185_v33 = vld [vmem:[#allocation0 + $0x83] ss:$8 sm:$0xf]   ;;  %95 = vst [vmem:[#allocation0 + $0x48] sm:$0xf] %v314_v25 }
  0x19   :  { %v189_v34 = vsel %vm132_vm0, %v187_v28, %v185_v33  ;;  %99 = vst [vmem:[#allocation0 + $0x40] sm:$0xf] %v315_v26  ;;  %v228_v47 = vld [vmem:[#allocation0 + $0x82] ss:$8 sm:$0xf]  }
  0x1a   :  { %190 = vrot.lane.b32.xlu1 %v189_v34, %s338_s15  ;;  %7 = vst [vmem:[#allocation0 + $0xf8] sm:$0xf] %v292_v30  ;;  %v252_v51 = vld [vmem:[#allocation0 + $0x1] ss:$8 sm:$0xf0]   ;;  %v232_v52 = vsel %vm132_vm0, %v230_v48, %v228_v47 }
  0x1b   :  { %11 = vst [vmem:[#allocation0 + $0xf0] sm:$0xf] %v293_v31  ;;  %v254_v55 = vsel %vm132_vm0, %v252_v51, %v250_v49  ;;  %v271_v1 = vld [vmem:[#allocation0 + $0x81] ss:$8 sm:$0xf]  }
  0x1c   :  { %15 = vst [vmem:[#allocation0 + $0xe8] sm:$0xf] %v294_v35  ;;  %v176_v41 = vld [vmem:[#allocation0 + $0x43] ss:$8 sm:$0xf0]  }
  0x1d   :  { %19 = vst [vmem:[#allocation0 + $0xe0] sm:$0xf] %v295_v36  ;;  %v219_v42 = vld [vmem:[#allocation0 + $0x42] ss:$8 sm:$0xf0]  }
  0x1e   :  { %23 = vst [vmem:[#allocation0 + $0xd8] sm:$0xf] %v296_v37  ;;  %v262_v57 = vld [vmem:[#allocation0 + $0x41] ss:$8 sm:$0xf0]  }
  0x1f   :  { %27 = vst [vmem:[#allocation0 + $0xd0] sm:$0xf] %v297_v38  ;;  %v273_v2 = vld [vmem:[#allocation0 + $0x81] ss:$8 sm:$0xf0]  }
  0x20   :  { %v174_v43 = vld [vmem:[#allocation0 + $0x43] ss:$8 sm:$0xf]   ;;  %31 = vst [vmem:[#allocation0 + $0xc8] sm:$0xf] %v298_v39  ;;  %v275_v3 = vsel %vm132_vm0, %v273_v2, %v271_v1 }
  0x21   :  { %v178_v44 = vsel %vm132_vm0, %v176_v41, %v174_v43  ;;  %35 = vst [vmem:[#allocation0 + $0xc0] sm:$0xf] %v299_v40  ;;  %v217_v45 = vld [vmem:[#allocation0 + $0x42] ss:$8 sm:$0xf]  }
  0x22   :  { %179 = vrot.lane.b32.xlu0 %v178_v44, %s338_s15  ;;  %v221_v46 = vsel %vm132_vm0, %v219_v42, %v217_v45  ;;  %v260_v56 = vld [vmem:[#allocation0 + $0x41] ss:$8 sm:$0xf]   ;;  %v130_v4 = vld [vmem:[#allocation0] ss:$8 sm:$0xf]  }
  0x23   :  { %222 = vrot.lane.b32.xlu2 %v221_v46, %s339_s30  ;;  %v264_v63 = vsel %vm132_vm0, %v262_v57, %v260_v56  ;;  %v131_v5 = vld [vmem:[#allocation0] ss:$8 sm:$0xf0]  }
  0x24   :  { %v198_v50 = vld [vmem:[#allocation0 + $0xc3] ss:$8 sm:$0xf0]   ;;  %v241_v59 = vld [vmem:[#allocation0 + $0xc2] ss:$8 sm:$0xf0]   ;;  %v133_v6 = vsel %vm132_vm0, %v131_v5, %v130_v4 }
  0x25   :  { %v284_v61 = vld [vmem:[#allocation0 + $0xc1] ss:$8 sm:$0xf0]   ;;  %135 = vst.msk [vmem:[%s536_s1] sm:$0xff] %vm134_vm1, %v133_v6  }
  0x26   :  { %v146_v7 = vld [vmem:[#allocation0 + $0x80] ss:$8 sm:$0xf]  }
  0x27   :  { %v148_v8 = vld [vmem:[#allocation0 + $0x80] ss:$8 sm:$0xf0]  }
  0x28   :  { %v196_v53 = vld [vmem:[#allocation0 + $0xc3] ss:$8 sm:$0xf]   ;;  %v239_v58 = vld [vmem:[#allocation0 + $0xc2] ss:$8 sm:$0xf]   ;;  %v150_v9 = vsel %vm132_vm0, %v148_v8, %v146_v7 }
  0x29   :  { %v200_v54 = vsel %vm132_vm0, %v198_v50, %v196_v53  ;;  %v282_v60 = vld [vmem:[#allocation0 + $0xc1] ss:$8 sm:$0xf]   ;;  %v243_v62 = vsel %vm132_vm0, %v241_v59, %v239_v58  ;;  %324 = vst.msk [vmem:[%s536_s1 + $0x10] sm:$0xff] %vm134_vm1, %v150_v9  }
  0x2a   :  { %201 = vrot.lane.b32.xlu1 %v200_v54, %s338_s15  ;;  %233 = vrot.lane.b32.xlu0 %v232_v52, %s339_s30  ;;  %v286_v0 = vsel %vm132_vm0, %v284_v61, %v282_v60  ;;  %v137_v11 = vld [vmem:[#allocation0 + $0x40] ss:$8 sm:$0xf]  }
  0x2b   :  { %255 = vrot.lane.b32.xlu2 %v254_v55, %s340_s0  ;;  %v139_v12 = vld [vmem:[#allocation0 + $0x40] ss:$8 sm:$0xf0]  }
  0x2c   :  { %v141_v13 = vsel %vm132_vm0, %v139_v12, %v137_v11  ;;  %v155_v14 = vld [vmem:[#allocation0 + $0xc0] ss:$8 sm:$0xf]  }
  0x2d   :  { %323 = vst.msk [vmem:[%s536_s1 + $0x8] sm:$0xff] %vm134_vm1, %v141_v13   ;;  %v157_v15 = vld [vmem:[#allocation0 + $0xc0] ss:$8 sm:$0xf0]  }
  0x2e   :  { %v159_v16 = vsel %vm132_vm0, %v157_v15, %v155_v14 }
  0x2f   :  { %325 = vst.msk [vmem:[%s536_s1 + $0x18] sm:$0xff] %vm134_vm1, %v159_v16  }
  0x32   :  { %244 = vrot.lane.b32.xlu1 %v243_v62, %s339_s30  ;;  %265 = vrot.lane.b32.xlu0 %v264_v63, %s340_s0 }
  0x33   :  { %287 = vrot.lane.b32.xlu2 %v286_v0, %s340_s0 }
  0x3a   :  { %276 = vrot.lane.b32.xlu1 %v275_v3, %s340_s0 }
  0x6d   :  { %v213_v10 = vpop.permute.xlu2 %212  }
  0x7d   :  { %v223_v17 = vpop.permute.xlu2 %222  }
  0x84   :  { %v170_v18 = vpop.permute.xlu0 %169  }
  0x85   :  { %172 = vst.msk [vmem:[%s536_s1] sm:$0xff] %vm171_vm2, %v170_v18   ;;  %v256_v19 = vpop.permute.xlu2 %255  }
  0x86   :  { %215 = vst.msk [vmem:[%s536_s1] sm:$0xff] %vm214_vm3, %v213_v10  }
  0x87   :  { %258 = vst.msk [vmem:[%s536_s1] sm:$0xff] %vm257_vm4, %v256_v19  }
  0x8c   :  { %v191_v20 = vpop.permute.xlu1 %190  }
  0x8d   :  { %327 = vst.msk [vmem:[%s536_s1 + $0x10] sm:$0xff] %vm171_vm2, %v191_v20   ;;  %v288_v21 = vpop.permute.xlu2 %287  }
  0x94   :  { %v180_v22 = vpop.permute.xlu0 %179  }
  0x95   :  { %326 = vst.msk [vmem:[%s536_s1 + $0x8] sm:$0xff] %vm171_vm2, %v180_v22  }
  0x96   :  { %329 = vst.msk [vmem:[%s536_s1 + $0x8] sm:$0xff] %vm214_vm3, %v223_v17  }
  0x9c   :  { %v202_v23 = vpop.permute.xlu1 %201   ;;  %v234_v24 = vpop.permute.xlu0 %233  }
  0x9d   :  { %328 = vst.msk [vmem:[%s536_s1 + $0x18] sm:$0xff] %vm171_vm2, %v202_v23  }
  0x9e   :  { %330 = vst.msk [vmem:[%s536_s1 + $0x10] sm:$0xff] %vm214_vm3, %v234_v24  }
  0xa4   :  { %v245_v25 = vpop.permute.xlu1 %244   ;;  %v266_v26 = vpop.permute.xlu0 %265  }
  0xa5   :  { %331 = vst.msk [vmem:[%s536_s1 + $0x18] sm:$0xff] %vm214_vm3, %v245_v25  }
  0xa6   :  { %332 = vst.msk [vmem:[%s536_s1 + $0x8] sm:$0xff] %vm257_vm4, %v266_v26  }
  0xa7   :  { %334 = vst.msk [vmem:[%s536_s1 + $0x18] sm:$0xff] %vm257_vm4, %v288_v21  }
  0xac   :  { %v277_v27 = vpop.permute.xlu1 %276  }
  0xad   :  { %333 = vst.msk [vmem:[%s536_s1 + $0x10] sm:$0xff] %vm257_vm4, %v277_v27  }

// kernel: cross_modal_encoder.1
= control target key start
LH: loop header
LB: loop body
LE: loop exit
PB: predicated region body
PF: predicated region fallthrough
CT: control target
= control target key end

     0   :  { %vm114_vm0 = vcmask 261120   ;;  %vm282_vm1 = vcmask 130048   ;;  %vm402_vm2 = vcmask 523264   ;;  %s2820_s6 = inlined_call_operand.vmem [shape: bf16[32,128], index: 6, kind: input, shape index: {}]   ;;  %s2821_s5 = inlined_call_operand.vmem [shape: bf16[32,128], index: 5, kind: input, shape index: {}]   ;;  %s2822_s1 = inlined_call_operand.vmem [shape: f32[32,32], index: 1, kind: input, shape index: {}]   ;;  %s2823_s0 = inlined_call_operand.vmem [shape: f32[32,32], index: 0, kind: input, shape index: {}]   ;;  %s2824_s8 = inlined_call_operand.vmem [shape: bf16[32,128], index: 8, kind: input, shape index: {}]   ;;  %s2825_s7 = inlined_call_operand.vmem [shape: f32[1,128], index: 7, kind: input, shape index: {}]   ;;  %s2826_s2 = inlined_call_operand.vmem [shape: f32[16,32], index: 2, kind: input, shape index: {}]   ;;  %s2827_s9 = inlined_call_operand.vmem [shape: f32[1,128], index: 9, kind: input, shape index: {}]   ;;  %s2828_s10 = inlined_call_operand.vmem [shape: bf16[128,16], index: 10, kind: input, shape index: {}]   ;;  %s2829_s11 = inlined_call_operand.vmem [shape: f32[128,128], index: 11, kind: input, shape index: {}]   ;;  %s2830_s3 = inlined_call_operand.vmem [shape: f32[32,128], index: 3, kind: input, shape index: {}]   ;;  %s2831_s12 = inlined_call_operand.vmem [shape: f32[128,128], index: 12, kind: input, shape index: {}]   ;;  %s2832_s13 = inlined_call_operand.vmem [shape: bf16[64,64], index: 13, kind: input, shape index: {}]   ;;  %s2833_s14 = inlined_call_operand.vmem [shape: f32[1,64], index: 14, kind: input, shape index: {}]   ;;  %s2834_s16 = inlined_call_operand.vmem [shape: f32[1,64], index: 16, kind: input, shape index: {}]   ;;  %s2835_s15 = inlined_call_operand.vmem [shape: bf16[32,64], index: 15, kind: input, shape index: {}]   ;;  %s2836_s17 = inlined_call_operand.vmem [shape: bf16[128,32], index: 17, kind: input, shape index: {}]   ;;  %s2837_s18 = inlined_call_operand.vmem [shape: f32[128,32], index: 18, kind: input, shape index: {}]   ;;  %s2838_s4 = inlined_call_operand.vmem [shape: f32[32,128], index: 4, kind: input, shape index: {}]   ;;  %s2839_s19 = inlined_call_operand.vmem [shape: f32[128,128], index: 19, kind: input, shape index: {}]   ;;  %s2840_s21 = inlined_call_operand.vmem [shape: f32[1,32], index: 21, kind: input, shape index: {}]   ;;  %s2841_s20 = inlined_call_operand.vmem [shape: bf16[32,32], index: 20, kind: input, shape index: {}]   ;;  %s2842_s24 = inlined_call_operand.<no memory space> [shape: f32[1], index: 24, kind: input, shape index: {}]   ;;  %s2843_s22 = inlined_call_operand.vmem [shape: f32[2,32], index: 22, kind: input, shape index: {}]   ;;  %s2844_s23 = inlined_call_operand.vmem [shape: f32[2,32], index: 23, kind: input, shape index: {}]   ;;  %s2845_s25 = inlined_call_operand.vmem [shape: f32[32,32], index: 25, kind: output, shape index: {}]  }
   0x1   :  { %2854 = sst [smem:[#allocation3_spill]] %s2820_s6 }
   0x2   :  { %2855 = sst [smem:[#allocation4_spill]] %s2821_s5 }
   0x3   :  { %2856 = sst [smem:[#allocation5_spill]] %s2822_s1 }
   0x4   :  { %2857 = sst [smem:[#allocation6_spill]] %s2823_s0 }
   0x5   :  { %2858 = sst [smem:[#allocation7_spill]] %s2824_s8 }
   0x6   :  { %2859 = sst [smem:[#allocation8_spill]] %s2825_s7  ;;  %s1782_s7 = smov 64  }
   0x7   :  { %2860 = sst [smem:[#allocation9_spill]] %s2826_s2 }
   0x8   :  { %2861 = sst [smem:[#allocation10_spill]] %s2827_s9 }
   0x9   :  { %2862 = sst [smem:[#allocation11_spill]] %s2828_s10 }
   0xa   :  { %2863 = sst [smem:[#allocation12_spill]] %s2829_s11 }
   0xb   :  { %2864 = sst [smem:[#allocation13_spill]] %s2840_s21 }
   0xc   :  { %s2865_s6 = sld [smem:[#allocation3_spill]] }
   0xd   :  { %s2866_s21 = sld [smem:[#allocation4_spill]] }
   0xe   :  { %s2867_s27 = sld [smem:[#allocation5_spill]] }
   0xf   :  { %s2868_s29 = sld [smem:[#allocation6_spill]] }
  0x10   :  { %s2869_s26 = sld [smem:[#allocation7_spill]] }
  0x11   :  { %s2870_s9 = sld [smem:[#allocation9_spill]] }
  0x12   :  { %v1676_v0 = vld [vmem:[%s2865_s6 + $0x8] sm:$0xff]  ;;  %v1675_v2 = vld [vmem:[%s2865_s6] sm:$0xff]  ;;  %s2871_s10 = sld [smem:[#allocation10_spill]] }
  0x13   :  { %v1674_v1 = vld [vmem:[%s2866_s21 + $0x8] sm:$0xff]  ;;  %127 = vmatpush.bf16.msra.mxu2 %v1676_v0  ;;  %v1673_v5 = vld [vmem:[%s2866_s21] sm:$0xff]  ;;  %s2872_s11 = sld [smem:[#allocation11_spill]] }
  0x14   :  { %v92_v3 = vld [vmem:[%s2867_s27] sm:$0xff]  ;;  %v93_v4 = vld [vmem:[%s2867_s27 + $0x8] sm:$0xff]  ;;  %164 = vmatpush.bf16.msra.mxu1 %v1674_v1  ;;  %v94_v12 = vld [vmem:[%s2867_s27 + $0x10] sm:$0xff]  ;;  %s2873_s2 = sld [smem:[#allocation12_spill]] }
  0x15   :  { %v1937_v6 = vld [vmem:[%s2868_s29] sm:$0xff]  ;;  %v1942_v7 = vld [vmem:[%s2868_s29 + $0x8] sm:$0xff]  ;;  %v96_v9 = vpack.c.bf16 %v93_v4, %v92_v3  ;;  %v95_v13 = vld [vmem:[%s2867_s27 + $0x18] sm:$0xff]  ;;  %s758_s21 = ssub.f32 0.0, %s2842_s24 }
  0x16   :  { %v1678_v8 = vld [vmem:[%s2869_s26 + $0x8] sm:$0xff]  ;;  %v86_v10 = vpack.c.bf16 %v1942_v7, %v1937_v6  ;;  %v1677_v11 = vld [vmem:[%s2869_s26] sm:$0xff]  ;;  %v1963_v14 = vld [vmem:[%s2868_s29 + $0x10] sm:$0xff]  ;;  %v97_v16 = vpack.c.bf16 %v95_v13, %v94_v12 }
  0x17   :  { %128 = vmatpush.bf16.msra.mxu2 %v1675_v2  ;;  %v1968_v15 = vld [vmem:[%s2868_s29 + $0x18] sm:$0xff]  ;;  %v185_v18 = vld [vmem:[%s2870_s9] sm:$0xff]  ;;  %v186_v19 = vld [vmem:[%s2870_s9 + $0x8] sm:$0xff]  ;;  %s1784_s9 = smov 32  }
  0x18   :  { %165 = vmatpush.bf16.msra.mxu1 %v1673_v5  ;;  %v87_v17 = vpack.c.bf16 %v1968_v15, %v1963_v14  ;;  %v187_v20 = vpack.c.bf16 %v186_v19, %v185_v18  ;;  %v1708_v26 = vld [vmem:[%s2871_s10] ss:$0 sm:$0xff] }
  0x19   :  { %v1679_v31 = vld [vmem:[%s2872_s11] sm:$0xff]  ;;  %v1680_v32 = vld [vmem:[%s2872_s11 + $0x8] sm:$0xff]  ;;  %v1681_v33 = vld [vmem:[%s2872_s11 + $0x10] sm:$0xff] }
  0x1a   :  { %1522 = vmatmul.msk.bf16.vlgmr.msra.gmra.mxu2 %vm114_vm0, %v96_v9  ;;  %v1682_v34 = vld [vmem:[%s2872_s11 + $0x18] sm:$0xff]  ;;  %v1683_v35 = vld [vmem:[%s2872_s11 + $0x20] sm:$0xff]  ;;  %v1684_v36 = vld [vmem:[%s2872_s11 + $0x28] sm:$0xff] }
  0x1b   :  { %217 = vmatpush.bf16.msrb.mxu2 %v1678_v8  ;;  %1532 = vmatmul.msk.bf16.vlgmr.msra.gmra.mxu1 %vm114_vm0, %v86_v10  ;;  %v1685_v37 = vld [vmem:[%s2872_s11 + $0x30] sm:$0xff]  ;;  %v1686_v38 = vld [vmem:[%s2872_s11 + $0x38] sm:$0xff]  ;;  %v356_v40 = vld [vmem:[%s2873_s2] sm:$0xff]  ;;  %s2874_s11 = sld [smem:[#allocation8_spill]] }
  0x1c   :  { %v357_v41 = vld [vmem:[%s2873_s2 + $0x8] sm:$0xff]  ;;  %v358_v47 = vld [vmem:[%s2873_s2 + $0x10] sm:$0xff]  ;;  %v359_v48 = vld [vmem:[%s2873_s2 + $0x18] sm:$0xff] }
  0x1d   :  { %v360_v54 = vld [vmem:[%s2873_s2 + $0x20] sm:$0xff]  ;;  %v361_v55 = vld [vmem:[%s2873_s2 + $0x28] sm:$0xff]  ;;  %v362_v61 = vld [vmem:[%s2873_s2 + $0x30] sm:$0xff] }
  0x1e   :  { %v363_v62 = vld [vmem:[%s2873_s2 + $0x38] sm:$0xff]  ;;  %v364_v4 = vld [vmem:[%s2873_s2 + $0x40] sm:$0xff]  ;;  %v365_v5 = vld [vmem:[%s2873_s2 + $0x48] sm:$0xff] }
  0x1f   :  { %218 = vmatpush.bf16.msrb.mxu2 %v1677_v11  ;;  %v370_v19 = vld [vmem:[%s2873_s2 + $0x70] sm:$0xff] }
  0x2a   :  { %1523 = vmatmul.msk.bf16.gmra.mxu2 %vm114_vm0, %v97_v16 }
  0x2b   :  { %1533 = vmatmul.msk.bf16.gmra.mxu1 %vm114_vm0, %v87_v17 }
  0x3a   :  { %1542 = vmatmul.msk.bf16.vlgmr.msrb.gmra.mxu2 %vm114_vm0, %v187_v20  ;;  %v371_v20 = vld [vmem:[%s2873_s2 + $0x78] sm:$0xff] }
  0x9d   :  { %v1981_v21 = vpop.f32.mrf.mxu2 }
  0xa5   :  { %v1983_v22 = vpop.f32.mrf.mxu2 }
  0xad   :  { %v1985_v23 = vpop.f32.mrf.mxu2 }
  0xb5   :  { %v1987_v24 = vpop.f32.mrf.mxu2 }
  0xbd   :  { %v220_v25 = vpop.f32.mrf.mxu2 }
  0xbe   :  { %v221_v28 = vadd.f32 %v1708_v26, %v220_v25 }
  0xc5   :  { %v222_v27 = vpop.f32.mrf.mxu2 }
  0xc6   :  { %v223_v29 = vadd.f32 %v1708_v26, %v222_v27 }
  0xc8   :  { %v241_v30 = vpack.c.bf16 %v223_v29, %v221_v28  ;;  %v369_v28 = vld [vmem:[%s2873_s2 + $0x68] sm:$0xff] }
  0xca   :  { %314 = vmatpush.bf16.msra.mxu3 %v241_v30  ;;  %v368_v30 = vld [vmem:[%s2873_s2 + $0x60] sm:$0xff] }
  0xcd   :  { %1575 = vmatmul.msk.bf16.vlgmr.msra.gmra.mxu3 %vm282_vm1, %v1679_v31 }
  0xdd   :  { %1576 = vmatmul.msk.bf16.gmra.mxu3 %vm282_vm1, %v1680_v32 }
  0xed   :  { %1577 = vmatmul.msk.bf16.gmra.mxu3 %vm282_vm1, %v1681_v33 }
  0xfd   :  { %1578 = vmatmul.msk.bf16.gmra.mxu3 %vm282_vm1, %v1682_v34 }
 0x10d   :  { %1579 = vmatmul.msk.bf16.gmra.mxu3 %vm282_vm1, %v1683_v35  ;;  %v367_v35 = vld [vmem:[%s2873_s2 + $0x58] sm:$0xff] }
 0x11d   :  { %1580 = vmatmul.msk.bf16.gmra.mxu3 %vm282_vm1, %v1684_v36  ;;  %v366_v36 = vld [vmem:[%s2873_s2 + $0x50] sm:$0xff] }
 0x12d   :  { %1581 = vmatmul.msk.bf16.gmra.mxu3 %vm282_vm1, %v1685_v37 }
 0x13d   :  { %1582 = vmatmul.msk.bf16.gmra.mxu3 %vm282_vm1, %v1686_v38 }
 0x150   :  { %v316_v39 = vpop.f32.mrf.mxu3 }
 0x151   :  { %v372_v43 = vmul.f32 %v356_v40, %v316_v39 }
 0x158   :  { %v318_v42 = vpop.f32.mrf.mxu3 }
 0x159   :  { %v373_v44 = vmul.f32 %v357_v41, %v318_v42 }
 0x15b   :  { %v2022_v45 = vpack.c.bf16 %v373_v44, %v372_v43  ;;  %v167_v44 = vpop.f32.mrf.mxu1 }
 0x160   :  { %v321_v46 = vpop.f32.mrf.mxu3 }
 0x161   :  { %v374_v50 = vmul.f32 %v358_v47, %v321_v46 }
 0x163   :  { %v169_v47 = vpop.f32.mrf.mxu1 }
 0x168   :  { %v323_v49 = vpop.f32.mrf.mxu3 }
 0x169   :  { %v375_v51 = vmul.f32 %v359_v48, %v323_v49  ;;  %v170_v49 = vadd.f32 %v169_v47, %v1983_v22 }
 0x16b   :  { %v2030_v52 = vpack.c.bf16 %v375_v51, %v374_v50  ;;  %v168_v50 = vadd.f32 %v167_v44, %v1981_v21  ;;  %v1707_v51 = vld [vmem:[%s2874_s11] ss:$0 sm:$0xff]  ;;  %s2875_s11 = sld [smem:[#allocation13_spill]] }
 0x16d   :  { %v413_v48 = vsel %vm402_vm2, %v2030_v52, 0 }
 0x170   :  { %v326_v53 = vpop.f32.mrf.mxu3 }
 0x171   :  { %v376_v57 = vmul.f32 %v360_v54, %v326_v53  ;;  %v410_v53 = vsel %vm402_vm2, %v2022_v45, 0  ;;  %v172_v54 = vpop.f32.mrf.mxu1 }
 0x178   :  { %v328_v56 = vpop.f32.mrf.mxu3 }
 0x179   :  { %v377_v58 = vmul.f32 %v361_v55, %v328_v56  ;;  %v2095_v55 = vadd.f32 %v1707_v51, %v170_v49  ;;  %v2097_v56 = vadd.f32 %v1707_v51, %v168_v50  ;;  %v174_v21 = vpop.f32.mrf.mxu1 }
 0x17a   :  { %v175_v22 = vadd.f32 %v174_v21, %v1987_v24  ;;  %v398_v24 = vld [vmem:[%s2830_s3] sm:$0xff] }
 0x17b   :  { %v390_v59 = vpack.c.bf16 %v377_v58, %v376_v57  ;;  %v173_v57 = vadd.f32 %v172_v54, %v1985_v23 }
 0x17c   :  { %v2107_v58 = vadd.f32 %v1707_v51, %v175_v22 }
 0x17d   :  { %v416_v46 = vsel %vm402_vm2, %v390_v59, 0 }
 0x180   :  { %v331_v60 = vpop.f32.mrf.mxu3 }
 0x181   :  { %v378_v0 = vmul.f32 %v362_v61, %v331_v60 }
 0x188   :  { %v333_v63 = vpop.f32.mrf.mxu3 }
 0x189   :  { %v379_v1 = vmul.f32 %v363_v62, %v333_v63 }
 0x18b   :  { %v391_v2 = vpack.c.bf16 %v379_v1, %v378_v0  ;;  %v399_v0 = vld [vmem:[%s2830_s3 + $0x8] sm:$0xff] }
 0x18d   :  { %v419_v43 = vsel %vm402_vm2, %v391_v2, 0 }
 0x190   :  { %v336_v3 = vpop.f32.mrf.mxu3 }
 0x191   :  { %v380_v9 = vmul.f32 %v364_v4, %v336_v3  ;;  %v400_v3 = vld [vmem:[%s2830_s3 + $0x10] sm:$0xff] }
 0x198   :  { %v338_v8 = vpop.f32.mrf.mxu3 }
 0x199   :  { %v381_v10 = vmul.f32 %v365_v5, %v338_v8  ;;  %v487_v8 = vld [vmem:[%s2831_s12 + $0x78] sm:$0xff] }
 0x19a   :  { %488 = vmatpush.msrb.mxu1 %v487_v8 }
 0x19b   :  { %v2050_v11 = vpack.c.bf16 %v381_v10, %v380_v9  ;;  %v486_v9 = vld [vmem:[%s2831_s12 + $0x70] sm:$0xff]  ;;  %v401_v10 = vld [vmem:[%s2830_s3 + $0x18] sm:$0xff]  ;;  %s1783_s3 = smov 96  }
 0x19c   :  { %489 = vmatpush.msrb.mxu1 %v486_v9 }
 0x19d   :  { %v422_v42 = vsel %vm402_vm2, %v2050_v11, 0 }
 0x1a0   :  { %v341_v12 = vpop.f32.mrf.mxu3 }
 0x1a1   :  { %v382_v39 = vmul.f32 %v366_v36, %v341_v12  ;;  %v485_v12 = vld [vmem:[%s2831_s12 + $0x68] sm:$0xff] }
 0x1a2   :  { %490 = vmatpush.msrb.mxu1 %v485_v12  ;;  %v1688_v12 = vld [vmem:[%s2832_s13 + $0x8] sm:$0xff] }
 0x1a8   :  { %v343_v13 = vpop.f32.mrf.mxu3 }
 0x1a9   :  { %v383_v37 = vmul.f32 %v367_v35, %v343_v13 }
 0x1ab   :  { %v2074_v40 = vpack.c.bf16 %v383_v37, %v382_v39 }
 0x1ad   :  { %v425_v41 = vsel %vm402_vm2, %v2074_v40, 0 }
 0x1b0   :  { %v346_v16 = vpop.f32.mrf.mxu3 }
 0x1b1   :  { %v384_v33 = vmul.f32 %v368_v30, %v346_v16  ;;  %v484_v16 = vld [vmem:[%s2831_s12 + $0x60] sm:$0xff]  ;;  %v475_v30 = vld [vmem:[%s2831_s12 + $0x18] sm:$0xff] }
 0x1b2   :  { %491 = vmatpush.msrb.mxu1 %v484_v16 }
 0x1b8   :  { %v348_v17 = vpop.f32.mrf.mxu3 }
 0x1b9   :  { %v385_v31 = vmul.f32 %v369_v28, %v348_v17  ;;  %v477_v28 = vld [vmem:[%s2831_s12 + $0x28] sm:$0xff] }
 0x1bb   :  { %v394_v34 = vpack.c.bf16 %v385_v31, %v384_v33  ;;  %v472_v31 = vld [vmem:[%s2831_s12] sm:$0xff] }
 0x1bd   :  { %v428_v38 = vsel %vm402_vm2, %v394_v34, 0 }
 0x1c0   :  { %v351_v18 = vpop.f32.mrf.mxu3 }
 0x1c1   :  { %v386_v26 = vmul.f32 %v370_v19, %v351_v18  ;;  %v483_v18 = vld [vmem:[%s2831_s12 + $0x58] sm:$0xff]  ;;  %v482_v19 = vld [vmem:[%s2831_s12 + $0x50] sm:$0xff] }
 0x1c2   :  { %492 = vmatpush.msrb.mxu1 %v483_v18 }
 0x1c4   :  { %493 = vmatpush.msrb.mxu1 %v482_v19 }
 0x1c8   :  { %v353_v25 = vpop.f32.mrf.mxu3 }
 0x1c9   :  { %v387_v27 = vmul.f32 %v371_v20, %v353_v25  ;;  %v481_v20 = vld [vmem:[%s2831_s12 + $0x48] sm:$0xff]  ;;  %v480_v25 = vld [vmem:[%s2831_s12 + $0x40] sm:$0xff] }
 0x1ca   :  { %494 = vmatpush.msrb.mxu1 %v481_v20 }
 0x1cb   :  { %v395_v29 = vpack.c.bf16 %v387_v27, %v386_v26  ;;  %v479_v26 = vld [vmem:[%s2831_s12 + $0x38] sm:$0xff]  ;;  %v478_v27 = vld [vmem:[%s2831_s12 + $0x30] sm:$0xff] }
 0x1cc   :  { %495 = vmatpush.msrb.mxu1 %v480_v25 }
 0x1cd   :  { %549 = vrot.lane.b32.xlu2 %v395_v29, %s1782_s7  ;;  %v431_v32 = vsel %vm402_vm2, %v395_v29, 0  ;;  %v476_v29 = vld [vmem:[%s2831_s12 + $0x20] sm:$0xff] }
 0x1ce   :  { %433 = vmatpush.bf16.xpose.msra.mxu0 %v431_v32  ;;  %496 = vmatpush.msrb.mxu1 %v479_v26  ;;  %v1709_v26 = vld [vmem:[%s2833_s14] ss:$0 sm:$0xff] }
 0x1d0   :  { %497 = vmatpush.msrb.mxu1 %v478_v27 }
 0x1d2   :  { %498 = vmatpush.msrb.mxu1 %v477_v28 }
 0x1d4   :  { %499 = vmatpush.msrb.mxu1 %v476_v29 }
 0x1d5   :  { %547 = vrot.lane.b32.xlu2 %v394_v34, %s1782_s7 }
 0x1d6   :  { %434 = vmatpush.bf16.xpose.msra.mxu0 %v428_v38  ;;  %500 = vmatpush.msrb.mxu1 %v475_v30 }
 0x1dd   :  { %541 = vrot.lane.b32.xlu2 %v391_v2, %s1782_s7 }
 0x1de   :  { %435 = vmatpush.bf16.xpose.msra.mxu0 %v425_v41 }
 0x1e5   :  { %539 = vrot.lane.b32.xlu2 %v390_v59, %s1782_s7  ;;  %v2109_v59 = vadd.f32 %v1707_v51, %v173_v57  ;;  %v1690_v57 = vld [vmem:[%s2832_s13 + $0x18] sm:$0xff] }
 0x1e6   :  { %436 = vmatpush.bf16.xpose.msra.mxu0 %v422_v42 }
 0x1e7   :  { %v2113_v60 = vpack.c.bf16 %v2107_v58, %v2109_v59 }
 0x1ed   :  { %537 = vrot.lane.b32.xlu2 %v2030_v52, %s1782_s7  ;;  %v2101_v52 = vpack.c.bf16 %v2095_v55, %v2097_v56 }
 0x1ee   :  { %437 = vmatpush.bf16.xpose.msra.mxu0 %v419_v43 }
 0x1f6   :  { %438 = vmatpush.bf16.xpose.msra.mxu0 %v416_v46 }
 0x1fe   :  { %439 = vmatpush.bf16.xpose.msra.mxu0 %v413_v48 }
 0x206   :  { %440 = vmatpush.bf16.xpose.msra.mxu0 %v410_v53 }
 0x20d   :  { %1583 = vmatmul.msk.bf16.vlgmr.msra.gmra.mxu0 %vm402_vm2, %v2101_v52 }
 0x21d   :  { %1584 = vmatmul.msk.bf16.gmra.mxu0 %vm402_vm2, %v2113_v60 }
 0x227   :  { %v550_v61 = vpop.permute.xlu2 %549 }
 0x228   :  { %559 = vmatpush.bf16.msra.mxu2 %v550_v61 }
 0x22f   :  { %v548_v62 = vpop.permute.xlu2 %547 }
 0x230   :  { %560 = vmatpush.bf16.msra.mxu2 %v548_v62 }
 0x237   :  { %v542_v50 = vpop.permute.xlu2 %541 }
 0x23f   :  { %v540_v53 = vpop.permute.xlu2 %539 }
 0x247   :  { %v538_v54 = vpop.permute.xlu2 %537 }
 0x28a   :  { %v442_v23 = vpop.f32.mrf.mxu0 }
 0x28b   :  { %v443_v63 = vadd.f32 %v442_v23, %v398_v24 }
 0x28d   :  { %452 = vmax.xlane.f32.xlu0 %v443_v63 }
 0x292   :  { %v444_v1 = vpop.f32.mrf.mxu0 }
 0x293   :  { %v445_v2 = vadd.f32 %v444_v1, %v399_v0 }
 0x295   :  { %454 = vmax.xlane.f32.xlu0 %v445_v2 }
 0x29a   :  { %v447_v4 = vpop.f32.mrf.mxu0 }
 0x29b   :  { %v448_v5 = vadd.f32 %v447_v4, %v400_v3 }
 0x29d   :  { %456 = vmax.xlane.f32.xlu1 %v448_v5 }
 0x2a2   :  { %v449_v13 = vpop.f32.mrf.mxu0 }
 0x2a3   :  { %v450_v17 = vadd.f32 %v449_v13, %v401_v10  ;;  %v1689_v10 = vld [vmem:[%s2832_s13 + $0x10] sm:$0xff]  ;;  %v1687_v13 = vld [vmem:[%s2832_s13] sm:$0xff] }
 0x2a5   :  { %458 = vmax.xlane.f32.xlu1 %v450_v17 }
 0x2a9   :  { %545 = vrot.lane.b32.xlu0 %v2074_v40, %s1782_s7 }
 0x2b1   :  { %535 = vrot.lane.b32.xlu0 %v2022_v45, %s1782_s7  ;;  %v474_v45 = vld [vmem:[%s2831_s12 + $0x10] sm:$0xff] }
 0x2b2   :  { %501 = vmatpush.msrb.mxu1 %v474_v45 }
 0x2be   :  { %543 = vrot.lane.b32.xlu1 %v2050_v11, %s1782_s7  ;;  %v473_v11 = vld [vmem:[%s2831_s12 + $0x8] sm:$0xff] }
 0x2bf   :  { %502 = vmatpush.msrb.mxu1 %v473_v11 }
 0x2c1   :  { %503 = vmatpush.msrb.mxu1 %v472_v31 }
 0x2c3   :  { %626 = vmatpush.bf16.msra.mxu1 %v1690_v57 }
 0x2c7   :  { %627 = vmatpush.bf16.msra.mxu1 %v1689_v10 }
 0x2cb   :  { %628 = vmatpush.bf16.msra.mxu1 %v1688_v12  ;;  %v2304_v12 = vld [vmem:[%s2837_s18 + $0x10] sm:$0xff] }
 0x2cf   :  { %629 = vmatpush.bf16.msra.mxu1 %v1687_v13  ;;  %v2309_v13 = vld [vmem:[%s2837_s18 + $0x18] sm:$0xff] }
 0x300   :  { %v453_v32 = vpop.xlane.xlu0 %452 }
 0x301   :  { %v460_v33 = vsub.f32 %v443_v63, %v453_v32 }
 0x303   :  { %v464_v34 = vmul.f32 1.442695, %v460_v33  ;;  %v1692_v33 = vld [vmem:[%s2835_s15 + $0x8] sm:$0xff] }
 0x305   :  { %1712 = vpow2.f32 %v464_v34  ;;  %v1691_v34 = vld [vmem:[%s2835_s15] sm:$0xff] }
 0x308   :  { %v455_v35 = vpop.xlane.xlu0 %454 }
 0x309   :  { %v461_v36 = vsub.f32 %v445_v2, %v455_v35 }
 0x30b   :  { %v1713_v37 = vpop.eup %1712  ;;  %v466_v38 = vmul.f32 1.442695, %v461_v36 }
 0x30c   :  { %504 = vmatmul.f32.vlgmr.msrb.gmra.mxu1 %v1713_v37 }
 0x30d   :  { %1714 = vpow2.f32 %v466_v38 }
 0x310   :  { %v457_v39 = vpop.xlane.xlu1 %456 }
 0x311   :  { %v462_v40 = vsub.f32 %v448_v5, %v457_v39 }
 0x313   :  { %v1715_v41 = vpop.eup %1714  ;;  %v468_v42 = vmul.f32 1.442695, %v462_v40 }
 0x314   :  { %507 = vmatmul.f32.gmra.mxu1 %v1715_v41 }
 0x315   :  { %1716 = vpow2.f32 %v468_v42 }
 0x318   :  { %v459_v43 = vpop.xlane.xlu1 %458 }
 0x319   :  { %v463_v44 = vsub.f32 %v450_v17, %v459_v43 }
 0x31b   :  { %v1717_v46 = vpop.eup %1716  ;;  %v470_v47 = vmul.f32 1.442695, %v463_v44  ;;  %v546_v48 = vpop.permute.xlu0 %545 }
 0x31c   :  { %510 = vmatmul.f32.gmra.mxu1 %v1717_v46  ;;  %561 = vmatpush.bf16.msra.mxu2 %v546_v48 }
 0x31d   :  { %1718 = vpow2.f32 %v470_v47 }
 0x323   :  { %v1719_v49 = vpop.eup %1718  ;;  %v536_v21 = vpop.permute.xlu0 %535 }
 0x324   :  { %513 = vmatmul.f32.gmra.mxu1 %v1719_v49 }
 0x330   :  { %v544_v51 = vpop.permute.xlu1 %543 }
 0x331   :  { %562 = vmatpush.bf16.msra.mxu2 %v544_v51 }
 0x335   :  { %563 = vmatpush.bf16.msra.mxu2 %v542_v50 }
 0x339   :  { %564 = vmatpush.bf16.msra.mxu2 %v540_v53 }
 0x33d   :  { %565 = vmatpush.bf16.msra.mxu2 %v538_v54 }
 0x341   :  { %566 = vmatpush.bf16.msra.mxu2 %v536_v21 }
 0x345   :  { %810 = vmatpush.bf16.msrb.mxu2 %v1692_v33 }
 0x349   :  { %811 = vmatpush.bf16.msrb.mxu2 %v1691_v34 }
 0x389   :  { %v505_v22 = vpop.f32.mrf.mxu1 }
 0x38a   :  { %1720 = vrcp.f32 %v505_v22  ;;  %v1693_v22 = vld [vmem:[%s2836_s17] sm:$0xff] }
 0x390   :  { %v1721_v62 = vpop.eup %1720 }
 0x391   :  { %v508_v61 = vpop.f32.mrf.mxu1  ;;  %v521_v23 = vmul.f32 %v1721_v62, %v1713_v37  ;;  %v1696_v62 = vld [vmem:[%s2836_s17 + $0x18] sm:$0xff] }
 0x392   :  { %1722 = vrcp.f32 %v508_v61  ;;  %v1694_v61 = vld [vmem:[%s2836_s17 + $0x8] sm:$0xff] }
 0x398   :  { %v1723_v24 = vpop.eup %1722 }
 0x399   :  { %v522_v63 = vmul.f32 %v1723_v24, %v1715_v41  ;;  %v511_v0 = vpop.f32.mrf.mxu1  ;;  %v1697_v24 = vld [vmem:[%s2836_s17 + $0x20] sm:$0xff] }
 0x39a   :  { %1724 = vrcp.f32 %v511_v0  ;;  %v1700_v0 = vld [vmem:[%s2836_s17 + $0x38] sm:$0xff] }
 0x39b   :  { %v525_v1 = vpack.c.bf16 %v522_v63, %v521_v23  ;;  %v1698_v23 = vld [vmem:[%s2836_s17 + $0x28] sm:$0xff]  ;;  %v1699_v63 = vld [vmem:[%s2836_s17 + $0x30] sm:$0xff] }
 0x39d   :  { %567 = vmatmul.bf16.vlgmr.msra.gmra.mxu2 %v525_v1 }
 0x3a0   :  { %v1725_v3 = vpop.eup %1724 }
 0x3a1   :  { %v514_v2 = vpop.f32.mrf.mxu1  ;;  %v523_v5 = vmul.f32 %v1725_v3, %v1717_v46  ;;  %v2291_v3 = vld [vmem:[%s2837_s18 + $0x8] sm:$0xff] }
 0x3a2   :  { %1726 = vrcp.f32 %v514_v2  ;;  %v2286_v2 = vld [vmem:[%s2837_s18] sm:$0xff] }
 0x3a8   :  { %v1727_v4 = vpop.eup %1726 }
 0x3a9   :  { %v524_v8 = vmul.f32 %v1727_v4, %v1719_v49 }
 0x3ab   :  { %v526_v9 = vpack.c.bf16 %v524_v8, %v523_v5 }
 0x3ad   :  { %572 = vmatmul.bf16.gmra.mxu2 %v526_v9 }
 0x420   :  { %v568_v16 = vpop.f32.mrf.mxu2 }
 0x428   :  { %v570_v17 = vpop.f32.mrf.mxu2 }
 0x429   :  { %v578_v18 = vpack.c.bf16 %v570_v17, %v568_v16 }
 0x42b   :  { %1601 = vmatmul.msk.bf16.vlgmr.msra.gmra.mxu1 %vm402_vm2, %v578_v18 }
 0x430   :  { %v573_v19 = vpop.f32.mrf.mxu2 }
 0x438   :  { %v575_v20 = vpop.f32.mrf.mxu2 }
 0x439   :  { %v579_v25 = vpack.c.bf16 %v575_v20, %v573_v19 }
 0x43b   :  { %1602 = vmatmul.msk.bf16.gmra.mxu1 %vm402_vm2, %v579_v25  ;;  %v2316_v25 = vld [vmem:[%s2837_s18 + $0x20] sm:$0xff] }
 0x4a8   :  { %v631_v27 = vpop.f32.mrf.mxu1 }
 0x4a9   :  { %v632_v28 = vadd.f32 %v1709_v26, %v631_v27 }
 0x4ab   :  { %645 = vrot.lane.b32.xlu2 %v632_v28, %s1783_s3 }
 0x4b0   :  { %v633_v29 = vpop.f32.mrf.mxu1 }
 0x4b1   :  { %v634_v30 = vadd.f32 %v1709_v26, %v633_v29 }
 0x4b3   :  { %647 = vrot.lane.b32.xlu1 %v634_v30, %s1783_s3 }
 0x4b8   :  { %v636_v45 = vpop.f32.mrf.mxu1 }
 0x4b9   :  { %v637_v11 = vadd.f32 %v1709_v26, %v636_v45 }
 0x4bb   :  { %649 = vrot.lane.b32.xlu0 %v637_v11, %s1783_s3  ;;  %v2328_v11 = vld [vmem:[%s2837_s18 + $0x30] sm:$0xff] }
 0x4c0   :  { %v638_v31 = vpop.f32.mrf.mxu1 }
 0x4c1   :  { %v639_v32 = vadd.f32 %v1709_v26, %v638_v31  ;;  %v2321_v26 = vld [vmem:[%s2837_s18 + $0x28] sm:$0xff]  ;;  %v2333_v31 = vld [vmem:[%s2837_s18 + $0x38] sm:$0xff] }
 0x4c3   :  { %651 = vrot.lane.b32.xlu2 %v639_v32, %s1783_s3 }
 0x4cb   :  { %1006 = vrot.lane.b32.xlu2 %v2113_v60, %s1782_s7 }
 0x505   :  { %v2212_v35 = vpop.permute.xlu2 %645 }
 0x506   :  { %v772_v60 = vadd.f32 %v2212_v35, %v1937_v6  ;;  %v1710_v6 = vld [vmem:[%s2834_s16] ss:$0 sm:$0xff] }
 0x51d   :  { %v2214_v36 = vpop.permute.xlu2 %651 }
 0x51e   :  { %v775_v43 = vadd.f32 %v2214_v36, %v1968_v15 }
 0x525   :  { %v2216_v37 = vpop.permute.xlu1 %647  ;;  %v1007_v38 = vpop.permute.xlu2 %1006 }
 0x526   :  { %v773_v39 = vadd.f32 %v2216_v37, %v1942_v7  ;;  %1016 = vmatpush.bf16.msrb.mxu1 %v1007_v38 }
 0x528   :  { %v776_v40 = vpack.c.bf16 %v773_v39, %v772_v60  ;;  %v2340_v39 = vld [vmem:[%s2837_s18 + $0x40] sm:$0xff] }
 0x52a   :  { %1611 = vmatmul.msk.bf16.vlgmr.msrb.gmra.mxu2 %vm114_vm0, %v776_v40  ;;  %v2345_v40 = vld [vmem:[%s2837_s18 + $0x48] sm:$0xff] }
 0x52d   :  { %v2223_v41 = vpop.permute.xlu0 %649 }
 0x52e   :  { %v774_v42 = vadd.f32 %v2223_v41, %v1963_v14 }
 0x530   :  { %v777_v44 = vpack.c.bf16 %v775_v43, %v774_v42 }
 0x53a   :  { %1612 = vmatmul.msk.bf16.gmra.mxu2 %vm114_vm0, %v777_v44 }
 0x5ad   :  { %v813_v46 = vpop.f32.mrf.mxu2 }
 0x5ae   :  { %v814_v47 = vadd.f32 %v1710_v6, %v813_v46 }
 0x5b5   :  { %v815_v7 = vpop.f32.mrf.mxu2 }
 0x5b6   :  { %v816_v48 = vadd.f32 %v1710_v6, %v815_v7 }
 0x5b8   :  { %v2233_v49 = vpack.c.bf16 %v816_v48, %v814_v47 }
 0x5ba   :  { %883 = vrot.lane.b32.xlu0 %v2233_v49, %s1783_s3 }
 0x5bd   :  { %v818_v14 = vpop.f32.mrf.mxu2 }
 0x5be   :  { %v819_v51 = vadd.f32 %v1710_v6, %v818_v14 }
 0x5c5   :  { %v820_v50 = vpop.f32.mrf.mxu2 }
 0x5c6   :  { %v821_v15 = vadd.f32 %v1710_v6, %v820_v50  ;;  %v2352_v50 = vld [vmem:[%s2837_s18 + $0x70] sm:$0xff] }
 0x5c8   :  { %v2237_v53 = vpack.c.bf16 %v821_v15, %v819_v51  ;;  %v2357_v51 = vld [vmem:[%s2837_s18 + $0x78] sm:$0xff] }
 0x5ca   :  { %885 = vrot.lane.b32.xlu1 %v2237_v53, %s1783_s3 }
 0x5d2   :  { %1004 = vrot.lane.b32.xlu1 %v2101_v52, %s1782_s7  ;;  %v1695_v52 = vld [vmem:[%s2836_s17 + $0x10] sm:$0xff] }
 0x62c   :  { %v884_v21 = vpop.permute.xlu0 %883 }
 0x63c   :  { %v886_v54 = vpop.permute.xlu1 %885 }
 0x63d   :  { %919 = vmatpush.bf16.msrb.mxu0 %v886_v54 }
 0x641   :  { %920 = vmatpush.bf16.msrb.mxu0 %v884_v21 }
 0x644   :  { %v1005_v57 = vpop.permute.xlu1 %1004  ;;  %1645 = vmatmul.msk.bf16.vlgmr.msrb.gmra.mxu0 %vm114_vm0, %v1693_v22 }
 0x645   :  { %1017 = vmatpush.bf16.msrb.mxu1 %v1005_v57 }
 0x648   :  { %1653 = vmatmul.msk.bf16.vlgmr.msrb.gmra.mxu1 %vm114_vm0, %v1693_v22  ;;  %v2364_v22 = vld [vmem:[%s2837_s18 + $0x68] sm:$0xff] }
 0x654   :  { %1646 = vmatmul.msk.bf16.gmra.mxu0 %vm114_vm0, %v1694_v61 }
 0x658   :  { %1654 = vmatmul.msk.bf16.gmra.mxu1 %vm114_vm0, %v1694_v61  ;;  %v2369_v61 = vld [vmem:[%s2837_s18 + $0x60] sm:$0xff] }
 0x664   :  { %1647 = vmatmul.msk.bf16.gmra.mxu0 %vm114_vm0, %v1695_v52 }
 0x668   :  { %1655 = vmatmul.msk.bf16.gmra.mxu1 %vm114_vm0, %v1695_v52 }
 0x674   :  { %1648 = vmatmul.msk.bf16.gmra.mxu0 %vm114_vm0, %v1696_v62 }
 0x678   :  { %1656 = vmatmul.msk.bf16.gmra.mxu1 %vm114_vm0, %v1696_v62 }
 0x684   :  { %1649 = vmatmul.msk.bf16.gmra.mxu0 %vm114_vm0, %v1697_v24 }
 0x688   :  { %1657 = vmatmul.msk.bf16.gmra.mxu1 %vm114_vm0, %v1697_v24 }
 0x694   :  { %1650 = vmatmul.msk.bf16.gmra.mxu0 %vm114_vm0, %v1698_v23 }
 0x698   :  { %1658 = vmatmul.msk.bf16.gmra.mxu1 %vm114_vm0, %v1698_v23 }
 0x6a4   :  { %1651 = vmatmul.msk.bf16.gmra.mxu0 %vm114_vm0, %v1699_v63 }
 0x6a8   :  { %1659 = vmatmul.msk.bf16.gmra.mxu1 %vm114_vm0, %v1699_v63  ;;  %v2377_v63 = vld [vmem:[%s2837_s18 + $0x58] sm:$0xff] }
 0x6b4   :  { %1652 = vmatmul.msk.bf16.gmra.mxu0 %vm114_vm0, %v1700_v0 }
 0x6b8   :  { %1660 = vmatmul.msk.bf16.gmra.mxu1 %vm114_vm0, %v1700_v0  ;;  %v2382_v0 = vld [vmem:[%s2837_s18 + $0x50] sm:$0xff] }
 0x6c1   :  { %v922_v1 = vpop.f32.mrf.mxu0 }
 0x6c2   :  { %v2294_v5 = vmul.f32 %v2286_v2, %v922_v1 }
 0x6c9   :  { %v924_v4 = vpop.f32.mrf.mxu0 }
 0x6ca   :  { %v2297_v8 = vmul.f32 %v2291_v3, %v924_v4 }
 0x6cc   :  { %v994_v9 = vpack.c.bf16 %v2297_v8, %v2294_v5  ;;  %v1083_v5 = vld [vmem:[%s2838_s4] sm:$0xff] }
 0x6d1   :  { %v927_v10 = vpop.f32.mrf.mxu0 }
 0x6d2   :  { %v980_v17 = vmul.f32 %v2304_v12, %v927_v10 }
 0x6d9   :  { %v929_v16 = vpop.f32.mrf.mxu0 }
 0x6da   :  { %v981_v18 = vmul.f32 %v2309_v13, %v929_v16 }
 0x6dc   :  { %v995_v19 = vpack.c.bf16 %v981_v18, %v980_v17 }
 0x6e1   :  { %v932_v20 = vpop.f32.mrf.mxu0 }
 0x6e2   :  { %v982_v28 = vmul.f32 %v2316_v25, %v932_v20 }
 0x6e9   :  { %v934_v27 = vpop.f32.mrf.mxu0 }
 0x6ea   :  { %v983_v29 = vmul.f32 %v2321_v26, %v934_v27 }
 0x6ec   :  { %v996_v30 = vpack.c.bf16 %v983_v29, %v982_v28  ;;  %v1097_v28 = vsel %vm114_vm0, %v995_v19, 0  ;;  %v1094_v29 = vsel %vm114_vm0, %v994_v9, 0 }
 0x6ee   :  { %v1100_v27 = vsel %vm114_vm0, %v996_v30, 0 }
 0x6f1   :  { %v937_v45 = vpop.f32.mrf.mxu0 }
 0x6f2   :  { %v984_v33 = vmul.f32 %v2328_v11, %v937_v45  ;;  %v1019_v45 = vpop.f32.mrf.mxu1 }
 0x6f9   :  { %v939_v32 = vpop.f32.mrf.mxu0 }
 0x6fa   :  { %v985_v34 = vmul.f32 %v2333_v31, %v939_v32  ;;  %v1021_v32 = vpop.f32.mrf.mxu1 }
 0x6fc   :  { %v997_v38 = vpack.c.bf16 %v985_v34, %v984_v33 }
 0x6fe   :  { %v1103_v20 = vsel %vm114_vm0, %v997_v38, 0 }
 0x701   :  { %v942_v60 = vpop.f32.mrf.mxu0 }
 0x702   :  { %v986_v43 = vmul.f32 %v2340_v39, %v942_v60  ;;  %v1024_v33 = vpop.f32.mrf.mxu1 }
 0x709   :  { %v944_v42 = vpop.f32.mrf.mxu0 }
 0x70a   :  { %v987_v44 = vmul.f32 %v2345_v40, %v944_v42  ;;  %v1026_v30 = vpop.f32.mrf.mxu1 }
 0x70c   :  { %v998_v46 = vpack.c.bf16 %v987_v44, %v986_v43  ;;  %v2415_v44 = vmul.f32 %v1019_v45, %v2286_v2  ;;  %v1171_v2 = vld [vmem:[%s2839_s19 + $0x78] sm:$0xff] }
 0x70d   :  { %1172 = vmatpush.msra.mxu2 %v1171_v2 }
 0x70e   :  { %v1106_v18 = vsel %vm114_vm0, %v998_v46, 0  ;;  %v1085_v46 = vld [vmem:[%s2838_s4 + $0x10] sm:$0xff] }
 0x711   :  { %v947_v6 = vpop.f32.mrf.mxu0 }
 0x712   :  { %v988_v10 = vmul.f32 %v2382_v0, %v947_v6  ;;  %v1029_v34 = vpop.f32.mrf.mxu1  ;;  %v2421_v6 = vmul.f32 %v1021_v32, %v2291_v3  ;;  %v2507_v32 = vsub.f32 %v2109_v59, %v2223_v41  ;;  %v1160_v59 = vld [vmem:[%s2839_s19 + $0x20] sm:$0xff]  ;;  %v1159_v41 = vld [vmem:[%s2839_s19 + $0x18] sm:$0xff] }
 0x719   :  { %v949_v7 = vpop.f32.mrf.mxu0 }
 0x71a   :  { %v989_v1 = vmul.f32 %v2377_v63, %v949_v7  ;;  %v1031_v38 = vpop.f32.mrf.mxu1  ;;  %v2424_v7 = vmul.f32 %v1024_v33, %v2304_v12 }
 0x71b   :  { %v2439_v3 = vmul.f32 %v1031_v38, %v2321_v26  ;;  %v1169_v26 = vld [vmem:[%s2839_s19 + $0x68] sm:$0xff] }
 0x71c   :  { %v999_v16 = vpack.c.bf16 %v989_v1, %v988_v10  ;;  %v1165_v10 = vld [vmem:[%s2839_s19 + $0x48] sm:$0xff] }
 0x71e   :  { %v1109_v17 = vsel %vm114_vm0, %v999_v16, 0 }
 0x721   :  { %v952_v47 = vpop.f32.mrf.mxu0 }
 0x722   :  { %v990_v24 = vmul.f32 %v2369_v61, %v952_v47  ;;  %v1034_v19 = vpop.f32.mrf.mxu1  ;;  %v2427_v47 = vmul.f32 %v1026_v30, %v2309_v13 }
 0x723   :  { %v2442_v12 = vmul.f32 %v1034_v19, %v2328_v11  ;;  %v1157_v19 = vld [vmem:[%s2839_s19 + $0x8] sm:$0xff] }
 0x729   :  { %v954_v48 = vpop.f32.mrf.mxu0 }
 0x72a   :  { %v991_v52 = vmul.f32 %v2364_v22, %v954_v48  ;;  %v1036_v60 = vpop.f32.mrf.mxu1  ;;  %v2430_v48 = vmul.f32 %v1029_v34, %v2316_v25  ;;  %v1158_v34 = vld [vmem:[%s2839_s19 + $0x10] sm:$0xff] }
 0x72b   :  { %v2445_v13 = vmul.f32 %v1036_v60, %v2333_v31  ;;  %v1156_v60 = vld [vmem:[%s2839_s19] sm:$0xff] }
 0x72c   :  { %v1000_v23 = vpack.c.bf16 %v991_v52, %v990_v24  ;;  %v1077_v11 = vpack.c.bf16 %v2439_v3, %v2430_v48  ;;  %v1168_v52 = vld [vmem:[%s2839_s19 + $0x60] sm:$0xff]  ;;  %v1086_v24 = vld [vmem:[%s2838_s4 + $0x18] sm:$0xff] }
 0x72d   :  { %v1078_v31 = vpack.c.bf16 %v2445_v13, %v2442_v12 }
 0x72e   :  { %v1112_v4 = vsel %vm114_vm0, %v1000_v23, 0  ;;  %v1166_v23 = vld [vmem:[%s2839_s19 + $0x50] sm:$0xff] }
 0x731   :  { %v957_v14 = vpop.f32.mrf.mxu0 }
 0x732   :  { %v992_v54 = vmul.f32 %v2352_v50, %v957_v14  ;;  %v2411_v43 = vpop.f32.mrf.mxu1  ;;  %v1170_v14 = vld [vmem:[%s2839_s19 + $0x70] sm:$0xff] }
 0x733   :  { %1173 = vmatpush.msra.mxu2 %v1170_v14  ;;  %v1067_v14 = vmul.f32 %v2411_v43, %v2340_v39  ;;  %v2554_v39 = vld [vmem:[%s2868_s29 + $0x10] sm:$0xff] }
 0x735   :  { %1174 = vmatpush.msra.mxu2 %v1169_v26 }
 0x737   :  { %1175 = vmatpush.msra.mxu2 %v1168_v52 }
 0x739   :  { %v959_v15 = vpop.f32.mrf.mxu0 }
 0x73a   :  { %v993_v21 = vmul.f32 %v2357_v51, %v959_v15 }
 0x73c   :  { %v1001_v57 = vpack.c.bf16 %v993_v21, %v992_v54  ;;  %v1075_v54 = vpack.c.bf16 %v2421_v6, %v2415_v44  ;;  %v1076_v21 = vpack.c.bf16 %v2427_v47, %v2424_v7 }
 0x73e   :  { %v1115_v62 = vsel %vm114_vm0, %v1001_v57, 0  ;;  %v2456_v57 = vpop.f32.mrf.mxu1 }
 0x73f   :  { %1117 = vmatpush.bf16.xpose.msrb.mxu3 %v1115_v62  ;;  %v1167_v62 = vld [vmem:[%s2839_s19 + $0x58] sm:$0xff] }
 0x740   :  { %1176 = vmatpush.msra.mxu2 %v1167_v62 }
 0x742   :  { %1177 = vmatpush.msra.mxu2 %v1166_v23 }
 0x744   :  { %1178 = vmatpush.msra.mxu2 %v1165_v10 }
 0x746   :  { %v1044_v16 = vpop.f32.mrf.mxu1 }
 0x747   :  { %1118 = vmatpush.bf16.xpose.msrb.mxu3 %v1112_v4 }
 0x74f   :  { %1119 = vmatpush.bf16.xpose.msrb.mxu3 %v1109_v17  ;;  %v1164_v17 = vld [vmem:[%s2839_s19 + $0x40] sm:$0xff] }
 0x750   :  { %1179 = vmatpush.msra.mxu2 %v1164_v17 }
 0x757   :  { %1120 = vmatpush.bf16.xpose.msrb.mxu3 %v1106_v18  ;;  %v2486_v18 = vsub.f32 %v2097_v56, %v2212_v35  ;;  %v2498_v56 = vsub.f32 %v2107_v58, %v2214_v36  ;;  %v2502_v35 = vsub.f32 %v2095_v55, %v2216_v37  ;;  %v663_v58 = vand.u32 2147483647, %v2507_v32  ;;  %v1161_v37 = vld [vmem:[%s2839_s19 + $0x28] sm:$0xff] }
 0x759   :  { %v664_v45 = vand.u32 2147483647, %v2498_v56  ;;  %v662_v30 = vand.u32 2147483647, %v2502_v35 }
 0x75f   :  { %1121 = vmatpush.bf16.xpose.msrb.mxu3 %v1103_v20  ;;  %v1163_v20 = vld [vmem:[%s2839_s19 + $0x38] sm:$0xff] }
 0x760   :  { %1180 = vmatpush.msra.mxu2 %v1163_v20 }
 0x767   :  { %1122 = vmatpush.bf16.xpose.msrb.mxu3 %v1100_v27  ;;  %v1162_v27 = vld [vmem:[%s2839_s19 + $0x30] sm:$0xff] }
 0x768   :  { %1181 = vmatpush.msra.mxu2 %v1162_v27 }
 0x76a   :  { %1182 = vmatpush.msra.mxu2 %v1161_v37  ;;  %v1701_v37 = vld [vmem:[%s2841_s20] sm:$0xff] }
 0x76c   :  { %1183 = vmatpush.msra.mxu2 %v1160_v59  ;;  %v2590_v59 = vld [vmem:[%s2868_s29 + $0x8] sm:$0xff] }
 0x76e   :  { %1184 = vmatpush.msra.mxu2 %v1159_v41  ;;  %v1282_v41 = vsel %vm114_vm0, %v2590_v59, 0.0 }
 0x76f   :  { %1123 = vmatpush.bf16.xpose.msrb.mxu3 %v1097_v28  ;;  %v661_v28 = vand.u32 2147483647, %v2486_v18 }
 0x770   :  { %1185 = vmatpush.msra.mxu2 %v1158_v34 }
 0x772   :  { %1186 = vmatpush.msra.mxu2 %v1157_v19 }
 0x774   :  { %1187 = vmatpush.msra.mxu2 %v1156_v60 }
 0x777   :  { %1124 = vmatpush.bf16.xpose.msrb.mxu3 %v1094_v29  ;;  %v1046_v29 = vpop.f32.mrf.mxu1 }
 0x77e   :  { %1661 = vmatmul.msk.bf16.vlgmr.msrb.gmra.mxu3 %vm114_vm0, %v2233_v49  ;;  %v1084_v49 = vld [vmem:[%s2838_s4 + $0x8] sm:$0xff] }
 0x77f   :  { %v1049_v33 = vpop.f32.mrf.mxu1 }
 0x787   :  { %v1051_v36 = vpop.f32.mrf.mxu1 }
 0x78e   :  { %1662 = vmatmul.msk.bf16.gmra.mxu3 %vm114_vm0, %v2237_v53 }
 0x78f   :  { %v1054_v55 = vpop.f32.mrf.mxu1 }
 0x797   :  { %v1056_v38 = vpop.f32.mrf.mxu1 }
 0x801   :  { %v1126_v8 = vpop.f32.mrf.mxu3 }
 0x802   :  { %v2403_v9 = vadd.f32 %v1126_v8, %v1083_v5  ;;  %v1073_v5 = vmul.f32 %v1054_v55, %v2352_v50  ;;  %v1074_v8 = vmul.f32 %v1056_v38, %v2357_v51  ;;  %v1068_v50 = vmul.f32 %v2456_v57, %v2345_v40  ;;  %v1702_v55 = vld [vmem:[%s2841_s20 + $0x8] sm:$0xff] }
 0x803   :  { %v1069_v51 = vmul.f32 %v1044_v16, %v2382_v0  ;;  %v1285_v40 = vsel %vm114_vm0, %v2554_v39, 0.0  ;;  %1264 = vmatpush.bf16.msra.mxu3 %v1702_v55 }
 0x804   :  { %1136 = vmax.xlane.f32.xlu0 %v2403_v9  ;;  %v1079_v52 = vpack.c.bf16 %v1068_v50, %v1067_v14 }
 0x807   :  { %1265 = vmatpush.bf16.msra.mxu3 %v1701_v37 }
 0x809   :  { %v1128_v53 = vpop.f32.mrf.mxu3 }
 0x80a   :  { %v2409_v42 = vadd.f32 %v1128_v53, %v1084_v49  ;;  %v1082_v49 = vpack.c.bf16 %v1074_v8, %v1073_v5  ;;  %v1071_v53 = vmul.f32 %v1049_v33, %v2369_v61 }
 0x80c   :  { %1138 = vmax.xlane.f32.xlu2 %v2409_v42  ;;  %1211 = vmatpush.bf16.msrb.mxu2 %v1082_v49 }
 0x811   :  { %v1131_v15 = vpop.f32.mrf.mxu3 }
 0x812   :  { %v2447_v25 = vadd.f32 %v1131_v15, %v1085_v46  ;;  %v1072_v46 = vmul.f32 %v1051_v36, %v2364_v22  ;;  %v1070_v15 = vmul.f32 %v1046_v29, %v2377_v63  ;;  %v2564_v22 = vld [vmem:[%s2868_s29] sm:$0xff]  ;;  %v2571_v63 = vld [vmem:[%s2868_s29 + $0x18] sm:$0xff] }
 0x813   :  { %v1279_v61 = vsel %vm114_vm0, %v2564_v22, 0.0  ;;  %v1288_v0 = vsel %vm114_vm0, %v2571_v63, 0.0 }
 0x814   :  { %1140 = vmax.xlane.f32.xlu1 %v2447_v25  ;;  %v1081_v2 = vpack.c.bf16 %v1072_v46, %v1071_v53  ;;  %v1080_v26 = vpack.c.bf16 %v1070_v15, %v1069_v51  ;;  %v1785_v46 = vmov 32.0   ;;  %v1711_v51 = vld [vmem:[%s2875_s11] ss:$0 sm:$0xff] }
 0x816   :  { %1212 = vmatpush.bf16.msrb.mxu2 %v1081_v2 }
 0x819   :  { %v1133_v1 = vpop.f32.mrf.mxu3 }
 0x81a   :  { %v2475_v4 = vadd.f32 %v1133_v1, %v1086_v24  ;;  %1213 = vmatpush.bf16.msrb.mxu2 %v1080_v26 }
 0x81c   :  { %1142 = vmax.xlane.f32.xlu0 %v2475_v4 }
 0x81e   :  { %1214 = vmatpush.bf16.msrb.mxu2 %v1079_v52 }
 0x822   :  { %1215 = vmatpush.bf16.msrb.mxu2 %v1078_v31 }
 0x824   :  { %669 = vrot.lane.b32.xlu2 %v661_v28, %s1784_s9 }
 0x826   :  { %1216 = vmatpush.bf16.msrb.mxu2 %v1077_v11 }
 0x82a   :  { %1217 = vmatpush.bf16.msrb.mxu2 %v1076_v21 }
 0x82c   :  { %675 = vrot.lane.b32.xlu2 %v664_v45, %s1784_s9 }
 0x82d   :  { %671 = vrot.lane.b32.xlu1 %v662_v30, %s1784_s9 }
 0x82e   :  { %1218 = vmatpush.bf16.msrb.mxu2 %v1075_v54 }
 0x830   :  { %673 = vrot.lane.b32.xlu0 %v663_v58, %s1784_s9 }
 0x855   :  { %1286 = vadd.xlane.f32.xlu2 %v1285_v40 }
 0x857   :  { %1283 = vadd.xlane.f32.xlu1 %v1282_v41 }
 0x85a   :  { %1280 = vadd.xlane.f32.xlu0 %v1279_v61 }
 0x862   :  { %1289 = vadd.xlane.f32.xlu0 %v1288_v0 }
 0x877   :  { %v1137_v43 = vpop.xlane.xlu0 %1136 }
 0x878   :  { %v1144_v44 = vsub.f32 %v2403_v9, %v1137_v43 }
 0x87a   :  { %v1148_v6 = vmul.f32 1.442695, %v1144_v44 }
 0x87c   :  { %1728 = vpow2.f32 %v1148_v6 }
 0x87f   :  { %v1139_v7 = vpop.xlane.xlu2 %1138 }
 0x880   :  { %v1145_v47 = vsub.f32 %v2409_v42, %v1139_v7 }
 0x882   :  { %v1729_v48 = vpop.eup %1728  ;;  %v1150_v3 = vmul.f32 1.442695, %v1145_v47 }
 0x883   :  { %1188 = vmatmul.f32.vlgmr.msra.gmra.mxu2 %v1729_v48 }
 0x884   :  { %1730 = vpow2.f32 %v1150_v3 }
 0x887   :  { %v1141_v12 = vpop.xlane.xlu1 %1140  ;;  %v670_v13 = vpop.permute.xlu2 %669 }
 0x888   :  { %v1146_v54 = vsub.f32 %v2447_v25, %v1141_v12  ;;  %v681_v21 = vsel %vm114_vm0, %v670_v13, 0.0 }
 0x889   :  { %682 = vadd.xlane.f32.xlu2 %v681_v21 }
 0x88a   :  { %v1731_v57 = vpop.eup %1730  ;;  %v1152_v11 = vmul.f32 1.442695, %v1146_v54 }
 0x88b   :  { %1191 = vmatmul.f32.gmra.mxu2 %v1731_v57 }
 0x88c   :  { %1732 = vpow2.f32 %v1152_v11 }
 0x88f   :  { %v1143_v9 = vpop.xlane.xlu0 %1142  ;;  %v676_v44 = vpop.permute.xlu2 %675 }
 0x890   :  { %v1147_v31 = vsub.f32 %v2475_v4, %v1143_v9 }
 0x892   :  { %v1733_v62 = vpop.eup %1732  ;;  %v1154_v42 = vmul.f32 1.442695, %v1147_v31 }
 0x893   :  { %1194 = vmatmul.f32.gmra.mxu2 %v1733_v62 }
 0x894   :  { %1734 = vpow2.f32 %v1154_v42 }
 0x89a   :  { %v1735_v24 = vpop.eup %1734 }
 0x89b   :  { %1197 = vmatmul.f32.gmra.mxu2 %v1735_v24 }
 0x89f   :  { %v672_v23 = vpop.permute.xlu1 %671 }
 0x8a0   :  { %v684_v1 = vsel %vm114_vm0, %v672_v23, 0.0 }
 0x8a1   :  { %685 = vadd.xlane.f32.xlu0 %v684_v1 }
 0x8a2   :  { %v2596_v49 = vpop.permute.xlu0 %673 }
 0x8c8   :  { %v1287_v13 = vpop.xlane.xlu2 %1286 }
 0x8cd   :  { %v1281_v53 = vpop.xlane.xlu0 %1280 }
 0x8d5   :  { %v1290_v2 = vpop.xlane.xlu0 %1289 }
 0x906   :  { %v1189_v25 = vpop.f32.mrf.mxu2 }
 0x907   :  { %1736 = vrcp.f32 %v1189_v25 }
 0x90d   :  { %v1737_v16 = vpop.eup %1736 }
 0x90e   :  { %v1192_v10 = vpop.f32.mrf.mxu2  ;;  %v1205_v20 = vmul.f32 %v1737_v16, %v1729_v48 }
 0x90f   :  { %1738 = vrcp.f32 %v1192_v10 }
 0x914   :  { %v686_v26 = vpop.xlane.xlu0 %685 }
 0x915   :  { %v1739_v17 = vpop.eup %1738  ;;  %v694_v0 = vmax.f32 %v686_v26, 1e-12 }
 0x916   :  { %v1206_v27 = vmul.f32 %v1739_v17, %v1731_v57  ;;  %v1195_v28 = vpop.f32.mrf.mxu2 }
 0x917   :  { %1740 = vrcp.f32 %v1195_v28  ;;  %vm716_vm5 = vweird.f32 %v694_v0 }
 0x918   :  { %v1209_v4 = vpack.c.bf16 %v1206_v27, %v1205_v20  ;;  %v1284_v27 = vpop.xlane.xlu1 %1283 }
 0x91a   :  { %1219 = vmatmul.bf16.vlgmr.msrb.gmra.mxu2 %v1209_v4 }
 0x91d   :  { %v1741_v45 = vpop.eup %1740 }
 0x91e   :  { %v1198_v29 = vpop.f32.mrf.mxu2  ;;  %v1207_v30 = vmul.f32 %v1741_v45, %v1733_v62  ;;  %v722_v45 = vand.u32 2147483648, %v694_v0 }
 0x91f   :  { %1742 = vrcp.f32 %v1198_v29 }
 0x920   :  { %1744 = vrcp.f32 %v1785_v46 }
 0x921   :  { %1746 = vrcp.f32 %v694_v0 }
 0x925   :  { %v1743_v33 = vpop.eup %1742 }
 0x926   :  { %v1208_v58 = vmul.f32 %v1743_v33, %v1735_v24  ;;  %v1745_v14 = vpop.eup %1744  ;;  %v690_v24 = vsel %vm114_vm0, %v676_v44, 0.0  ;;  %v720_v33 = vand.u32 2147483647, %v694_v0 }
 0x927   :  { %v1292_v50 = vmul.f32 32.0, %v1745_v14  ;;  %vm1296_vm3 = vweird.f32 %v1745_v14  ;;  %v1747_v12 = vpop.eup %1746 }
 0x928   :  { %v1210_v36 = vpack.c.bf16 %v1208_v58, %v1207_v30  ;;  %v712_v57 = vmul.f32 %v1747_v12, %v694_v0  ;;  %vm717_vm4 = vweird.f32 %v1747_v12  ;;  %vm721_vm7 = vcmp.eq.f32.partialorder %v720_v33, 8.507059e+37 }
 0x929   :  { %v1293_v15 = vsub.f32 1.0, %v1292_v50  ;;  %vm718_vm6 = vmor %vm716_vm5, %vm717_vm4 }
 0x92a   :  { %1224 = vmatmul.bf16.gmra.mxu2 %v1210_v36  ;;  %v713_v42 = vsub.f32 1.0, %v712_v57  ;;  %v723_v36 = vor.u32 1.1754944e-38, %v722_v45 }
 0x92b   :  { %v1294_v61 = vmul.f32 %v1745_v14, %v1293_v15 }
 0x92c   :  { %v714_v10 = vmul.f32 %v1747_v12, %v713_v42 }
 0x92d   :  { %v1295_v6 = vadd.f32 %v1745_v14, %v1294_v61 }
 0x92e   :  { %v715_v4 = vadd.f32 %v1747_v12, %v714_v10 }
 0x92f   :  { %v2607_v48 = vsel %vm1296_vm3, %v1745_v14, %v1295_v6 }
 0x930   :  { %v1298_v54 = vmul.f32 %v2607_v48, %v1281_v53  ;;  %v1300_v21 = vmul.f32 %v2607_v48, %v1287_v13  ;;  %v1301_v1 = vmul.f32 %v2607_v48, %v1290_v2  ;;  %v1299_v30 = vmul.f32 %v2607_v48, %v1284_v27  ;;  %v683_v53 = vpop.xlane.xlu2 %682 }
 0x931   :  { %v719_v58 = vsel %vm718_vm6, %v1747_v12, %v715_v4  ;;  %v693_v46 = vmax.f32 %v683_v53, 1e-12 }
 0x932   :  { %v2614_v9 = vsub.f32 %v2564_v22, %v1298_v54  ;;  %v2619_v62 = vsub.f32 %v2554_v39, %v1300_v21  ;;  %v2630_v39 = vsub.f32 %v2571_v63, %v1301_v1  ;;  %v2643_v37 = vsub.f32 %v2590_v59, %v1299_v30 }
 0x933   :  { %v724_v41 = vsel %vm721_vm7, %v723_v36, %v719_v58  ;;  %vm702_vm9 = vweird.f32 %v693_v46 }
 0x934   :  { %v1306_v25 = vmul.f32 %v2614_v9, %v2614_v9  ;;  %v1308_v22 = vmul.f32 %v2619_v62, %v2619_v62  ;;  %v1309_v63 = vmul.f32 %v2630_v39, %v2630_v39 }
 0x936   :  { %v1310_v20 = vsel %vm114_vm0, %v1306_v25, 0.0  ;;  %v1316_v28 = vsel %vm114_vm0, %v1308_v22, 0.0  ;;  %v1319_v55 = vsel %vm114_vm0, %v1309_v63, 0.0 }
 0x99d   :  { %v1220_v34 = vpop.f32.mrf.mxu2 }
 0x9a5   :  { %v1222_v38 = vpop.f32.mrf.mxu2 }
 0x9a6   :  { %v1230_v19 = vpack.c.bf16 %v1222_v38, %v1220_v34  ;;  %v687_v34 = vsel %vm114_vm0, %v2596_v49, 0.0  ;;  %v754_v38 = vmul.f32 %v724_v41, %v2502_v35 }
 0x9a8   :  { %1671 = vmatmul.msk.bf16.vlgmr.msra.gmra.mxu3 %vm114_vm0, %v1230_v19  ;;  %v1307_v19 = vmul.f32 %v2643_v37, %v2643_v37 }
 0x9ad   :  { %v1225_v5 = vpop.f32.mrf.mxu2 }
 0x9b5   :  { %v1227_v8 = vpop.f32.mrf.mxu2 }
 0x9b6   :  { %v1231_v60 = vpack.c.bf16 %v1227_v8, %v1225_v5  ;;  %v2653_v5 = vstv %s758_s21  ;;  %v1313_v8 = vsel %vm114_vm0, %v1307_v19, 0.0 }
 0x9b7   :  { %v761_v59 = vmul.f32 %v2653_v5, %v754_v38 }
 0x9b8   :  { %1672 = vmatmul.msk.bf16.gmra.mxu3 %vm114_vm0, %v1231_v60 }
 0x9b9   :  { %v766_v60 = vmul.f32 1.442695, %v761_v59 }
 0x9bb   :  { %1748 = vpow2.f32 %v766_v60 }
 0x9bc   :  { %1750 = vrcp.f32 %v693_v46 }
 0x9c1   :  { %v1749_v49 = vpop.eup %1748 }
 0x9c2   :  { %v1751_v2 = vpop.eup %1750 }
 0x9c3   :  { %v698_v35 = vmul.f32 %v1751_v2, %v693_v46  ;;  %vm703_vm8 = vweird.f32 %v1751_v2 }
 0x9c4   :  { %vm704_vm10 = vmor %vm702_vm9, %vm703_vm8 }
 0xa2b   :  { %v1267_v52 = vpop.f32.mrf.mxu3 }
 0xa2c   :  { %v2601_v40 = vadd.f32 %v1711_v51, %v1267_v52 }
 0xa2e   :  { %v1384_v43 = vsel %vm114_vm0, %v2601_v40, 0.0 }
 0xa2f   :  { %1385 = vadd.xlane.f32.xlu1 %v1384_v43 }
 0xa33   :  { %v1269_v7 = vpop.f32.mrf.mxu3 }
 0xa34   :  { %v2605_v47 = vadd.f32 %v1711_v51, %v1269_v7  ;;  %v708_v7 = vand.u32 2147483648, %v693_v46 }
 0xa36   :  { %v1387_v3 = vsel %vm114_vm0, %v2605_v47, 0.0  ;;  %v709_v54 = vor.u32 1.1754944e-38, %v708_v7 }
 0xa37   :  { %1388 = vadd.xlane.f32.xlu2 %v1387_v3  ;;  %v706_v3 = vand.u32 2147483647, %v693_v46 }
 0xa39   :  { %vm707_vm11 = vcmp.eq.f32.partialorder %v706_v3, 8.507059e+37 }
 0xa3b   :  { %v1272_v11 = vpop.f32.mrf.mxu3 }
 0xa3c   :  { %v2616_v31 = vadd.f32 %v1711_v51, %v1272_v11 }
 0xa3e   :  { %v1390_v23 = vsel %vm114_vm0, %v2616_v31, 0.0 }
 0xa3f   :  { %691 = vadd.xlane.f32.xlu2 %v690_v24  ;;  %1391 = vadd.xlane.f32.xlu0 %v1390_v23 }
 0xa43   :  { %v1274_v16 = vpop.f32.mrf.mxu3 }
 0xa44   :  { %v2632_v17 = vadd.f32 %v1711_v51, %v1274_v16  ;;  %v699_v51 = vsub.f32 1.0, %v698_v35 }
 0xa46   :  { %v1393_v29 = vsel %vm114_vm0, %v2632_v17, 0.0  ;;  %v700_v52 = vmul.f32 %v1751_v2, %v699_v51 }
 0xa47   :  { %1394 = vadd.xlane.f32.xlu1 %v1393_v29  ;;  %1311 = vadd.xlane.f32.xlu0 %v1310_v20 }
 0xa48   :  { %1317 = vadd.xlane.f32.xlu2 %v1316_v28  ;;  %v701_v44 = vadd.f32 %v1751_v2, %v700_v52 }
 0xa4a   :  { %v705_v12 = vsel %vm704_vm10, %v1751_v2, %v701_v44 }
 0xa4f   :  { %688 = vadd.xlane.f32.xlu1 %v687_v34  ;;  %1320 = vadd.xlane.f32.xlu0 %v1319_v55 }
 0xa57   :  { %1314 = vadd.xlane.f32.xlu1 %v1313_v8 }
 0xa63   :  { %1492 = vrot.lane.b32.xlu0 %v1749_v49, %s1784_s9 }
 0xaa2   :  { %v1386_v14 = vpop.xlane.xlu1 %1385 }
 0xaa3   :  { %v1396_v50 = vmul.f32 %v1386_v14, %v2607_v48 }
 0xaa5   :  { %v2660_v15 = vsub.f32 %v2601_v40, %v1396_v50 }
 0xaa7   :  { %v1404_v26 = vmul.f32 %v2660_v15, %v2660_v15 }
 0xaa9   :  { %v1408_v61 = vsel %vm114_vm0, %v1404_v26, 0.0 }
 0xaaa   :  { %v1389_v0 = vpop.xlane.xlu2 %1388  ;;  %1409 = vadd.xlane.f32.xlu1 %v1408_v61 }
 0xaab   :  { %v1397_v43 = vmul.f32 %v1389_v0, %v2607_v48 }
 0xaad   :  { %v2667_v6 = vsub.f32 %v2605_v47, %v1397_v43  ;;  %v710_v47 = vsel %vm707_vm11, %v709_v54, %v705_v12 }
 0xaae   :  { %v753_v23 = vmul.f32 %v710_v47, %v2486_v18 }
 0xaaf   :  { %v1405_v40 = vmul.f32 %v2667_v6, %v2667_v6 }
 0xab0   :  { %v760_v20 = vmul.f32 %v2653_v5, %v753_v23 }
 0xab1   :  { %v1411_v13 = vsel %vm114_vm0, %v1405_v40, 0.0 }
 0xab2   :  { %1412 = vadd.xlane.f32.xlu2 %v1411_v13  ;;  %v692_v21 = vpop.xlane.xlu2 %691  ;;  %v1392_v57 = vpop.xlane.xlu0 %1391  ;;  %v764_v29 = vmul.f32 1.442695, %v760_v20 }
 0xab3   :  { %v696_v11 = vmax.f32 %v692_v21, 1e-12  ;;  %v1398_v42 = vmul.f32 %v1392_v57, %v2607_v48 }
 0xab5   :  { %1752 = vrcp.f32 %v696_v11  ;;  %v2674_v24 = vsub.f32 %v2616_v31, %v1398_v42  ;;  %v750_v4 = vand.u32 2147483648, %v696_v11  ;;  %v748_v33 = vand.u32 2147483647, %v696_v11 }
 0xab6   :  { %vm744_vm13 = vweird.f32 %v696_v11  ;;  %1754 = vpow2.f32 %v764_v29 }
 0xab7   :  { %v1406_v1 = vmul.f32 %v2674_v24, %v2674_v24  ;;  %v751_v36 = vor.u32 1.1754944e-38, %v750_v4  ;;  %vm749_vm15 = vcmp.eq.f32.partialorder %v748_v33, 8.507059e+37 }
 0xab9   :  { %v1414_v22 = vsel %vm114_vm0, %v1406_v1, 0.0 }
 0xaba   :  { %v1395_v25 = vpop.xlane.xlu1 %1394  ;;  %1415 = vadd.xlane.f32.xlu0 %v1414_v22  ;;  %v1312_v43 = vpop.xlane.xlu0 %1311 }
 0xabb   :  { %v1753_v10 = vpop.eup %1752  ;;  %v1399_v16 = vmul.f32 %v1395_v25, %v2607_v48  ;;  %v1322_v44 = vmul.f32 %v1312_v43, %v2607_v48  ;;  %v1318_v57 = vpop.xlane.xlu2 %1317 }
 0xabc   :  { %v740_v27 = vmul.f32 %v1753_v10, %v696_v11  ;;  %vm745_vm12 = vweird.f32 %v1753_v10  ;;  %v1755_v19 = vpop.eup %1754  ;;  %v1324_v22 = vmul.f32 %v1318_v57, %v2607_v48 }
 0xabd   :  { %v2683_v28 = vsub.f32 %v2632_v17, %v1399_v16  ;;  %vm746_vm14 = vmor %vm744_vm13, %vm745_vm12  ;;  %v1326_v7 = vadd.f32 1e-05, %v1322_v44 }
 0xabe   :  { %v741_v31 = vsub.f32 1.0, %v740_v27  ;;  %v2706_v27 = vadd.f32 1e-05, %v1324_v22 }
 0xabf   :  { %v1407_v18 = vmul.f32 %v2683_v28, %v2683_v28  ;;  %vm1336_vm5 = vweird.f32 %v1326_v7 }
 0xac0   :  { %v742_v45 = vmul.f32 %v1753_v10, %v741_v31 }
 0xac1   :  { %v1417_v63 = vsel %vm114_vm0, %v1407_v18, 0.0 }
 0xac2   :  { %v743_v30 = vadd.f32 %v1753_v10, %v742_v45  ;;  %1418 = vadd.xlane.f32.xlu1 %v1417_v63  ;;  %v689_v58 = vpop.xlane.xlu1 %688 }
 0xac3   :  { %v695_v55 = vmax.f32 %v689_v58, 1e-12 }
 0xac4   :  { %v747_v17 = vsel %vm746_vm14, %v1753_v10, %v743_v30 }
 0xac5   :  { %v752_v41 = vsel %vm749_vm15, %v751_v36, %v747_v17  ;;  %1756 = vrcp.f32 %v695_v55  ;;  %v736_v53 = vand.u32 2147483648, %v695_v55  ;;  %v734_v2 = vand.u32 2147483647, %v695_v55 }
 0xac6   :  { %v756_v34 = vmul.f32 %v752_v41, %v2498_v56  ;;  %vm730_vm2 = vweird.f32 %v695_v55 }
 0xac7   :  { %v737_v50 = vor.u32 1.1754944e-38, %v736_v53  ;;  %vm735_vm4 = vcmp.eq.f32.partialorder %v734_v2, 8.507059e+37 }
 0xac8   :  { %v763_v38 = vmul.f32 %v2653_v5, %v756_v34  ;;  %v1277_v34 = vld [vmem:[%s2843_s22] sm:$0x3] }
 0xaca   :  { %1490 = vrot.lane.b32.xlu2 %v1755_v19, %s1784_s9  ;;  %v770_v59 = vmul.f32 1.442695, %v763_v38  ;;  %v1315_v3 = vpop.xlane.xlu1 %1314 }
 0xacb   :  { %v1757_v8 = vpop.eup %1756  ;;  %v1323_v40 = vmul.f32 %v1315_v3, %v2607_v48 }
 0xacc   :  { %v726_v60 = vmul.f32 %v1757_v8, %v695_v55  ;;  %1758 = vpow2.f32 %v770_v59  ;;  %vm731_vm1 = vweird.f32 %v1757_v8 }
 0xacd   :  { %vm732_vm3 = vmor %vm730_vm2, %vm731_vm1  ;;  %v1327_v12 = vadd.f32 1e-05, %v1323_v40 }
 0xace   :  { %v727_v49 = vsub.f32 1.0, %v726_v60 }
 0xacf   :  { %vm1346_vm8 = vweird.f32 %v1327_v12 }
 0xad0   :  { %v728_v46 = vmul.f32 %v1757_v8, %v727_v49 }
 0xad2   :  { %v1759_v35 = vpop.eup %1758  ;;  %v729_v14 = vadd.f32 %v1757_v8, %v728_v46  ;;  %v2730_v46 = vperm.slane %v1277_v34, 0 }
 0xad3   :  { %1496 = vrot.lane.b32.xlu0 %v1759_v35, %s1784_s9 }
 0xad4   :  { %v733_v56 = vsel %vm732_vm3, %v1757_v8, %v729_v14 }
 0xad5   :  { %v738_v51 = vsel %vm735_vm4, %v737_v50, %v733_v56  ;;  %vm1356_vm4 = vweird.f32 %v2706_v27 }
 0xad6   :  { %v755_v26 = vmul.f32 %v738_v51, %v2507_v32  ;;  %v1321_v32 = vpop.xlane.xlu0 %1320  ;;  %v1278_v51 = vld [vmem:[%s2844_s23] sm:$0x3] }
 0xad7   :  { %v1325_v47 = vmul.f32 %v1321_v32, %v2607_v48  ;;  %v2748_v43 = vperm.slane %v1278_v51, 0  ;;  %v2750_v44 = vperm.slane %v1278_v51, 1 }
 0xad8   :  { %v762_v52 = vmul.f32 %v2653_v5, %v755_v26 }
 0xad9   :  { %v2703_v10 = vadd.f32 1e-05, %v1325_v47 }
 0xada   :  { %v768_v61 = vmul.f32 1.442695, %v762_v52  ;;  %v2743_v52 = vperm.slane %v1277_v34, 1 }
 0xadb   :  { %vm1366_vm2 = vweird.f32 %v2703_v10 }
 0xadc   :  { %1760 = vpow2.f32 %v768_v61 }
 0xadd   :  { %1762 = vrsqrt.f32 %v1326_v7 }
 0xade   :  { %1764 = vrsqrt.f32 %v1327_v12  ;;  %v2708_v4 = vpop.permute.xlu0 %1492 }
 0xae2   :  { %v1761_v0 = vpop.eup %1760 }
 0xae3   :  { %1494 = vrot.lane.b32.xlu1 %v1761_v0, %s1784_s9  ;;  %v1763_v13 = vpop.eup %1762 }
 0xae4   :  { %v1331_v54 = vmul.f32 %v1763_v13, %v1326_v7  ;;  %v2697_v21 = vpop.eup %1764  ;;  %vm1337_vm6 = vweird.f32 %v1763_v13 }
 0xae5   :  { %v1341_v23 = vmul.f32 %v2697_v21, %v1327_v12  ;;  %vm2713_vm7 = vmor %vm1336_vm5, %vm1337_vm6  ;;  %vm1347_vm9 = vweird.f32 %v2697_v21 }
 0xae6   :  { %v1332_v5 = vmul.f32 %v1763_v13, %v1331_v54  ;;  %vm2734_vm11 = vmor %vm1346_vm8, %vm1347_vm9 }
 0xae7   :  { %v1342_v16 = vmul.f32 %v2697_v21, %v1341_v23 }
 0xae8   :  { %v1333_v25 = vmul.f32 0.5, %v1332_v5 }
 0xae9   :  { %v1343_v45 = vmul.f32 0.5, %v1342_v16 }
 0xaea   :  { %v1334_v20 = vsub.f32 1.5, %v1333_v25 }
 0xaeb   :  { %v1344_v55 = vsub.f32 1.5, %v1343_v45 }
 0xaec   :  { %v1335_v63 = vmul.f32 %v1763_v13, %v1334_v20 }
 0xaed   :  { %v1345_v2 = vmul.f32 %v2697_v21, %v1344_v55 }
 0xaee   :  { %v1339_v41 = vsel %vm2713_vm7, %v1763_v13, %v1335_v63 }
 0xaef   :  { %v1370_v35 = vmul.f32 %v1339_v41, %v2614_v9  ;;  %v1349_v12 = vsel %vm2734_vm11, %v2697_v21, %v1345_v2 }
 0xaf1   :  { %v1375_v7 = vmul.f32 %v2730_v46, %v1370_v35 }
 0xb1d   :  { %v1410_v11 = vpop.xlane.xlu1 %1409 }
 0xb1e   :  { %v1420_v42 = vmul.f32 %v1410_v11, %v2607_v48 }
 0xb20   :  { %v1424_v1 = vadd.f32 1e-05, %v1420_v42  ;;  %v1371_v42 = vmul.f32 %v1349_v12, %v2643_v37 }
 0xb22   :  { %1766 = vrsqrt.f32 %v1424_v1  ;;  %vm1434_vm12 = vweird.f32 %v1424_v1 }
 0xb23   :  { %1768 = vrsqrt.f32 %v2703_v10 }
 0xb24   :  { %1770 = vrsqrt.f32 %v2706_v27 }
 0xb25   :  { %v1413_v31 = vpop.xlane.xlu2 %1412 }
 0xb26   :  { %v1421_v18 = vmul.f32 %v1413_v31, %v2607_v48 }
 0xb28   :  { %v1767_v29 = vpop.eup %1766  ;;  %v1425_v33 = vadd.f32 1e-05, %v1421_v18  ;;  %v1376_v18 = vmul.f32 %v2730_v46, %v1371_v42 }
 0xb29   :  { %v1429_v30 = vmul.f32 %v1767_v29, %v1424_v1  ;;  %v2717_v17 = vpop.eup %1768  ;;  %vm1435_vm10 = vweird.f32 %v1767_v29 }
 0xb2a   :  { %1772 = vrsqrt.f32 %v1425_v33  ;;  %v2725_v59 = vpop.eup %1770  ;;  %v1361_v53 = vmul.f32 %v2717_v17, %v2703_v10  ;;  %vm1436_vm13 = vmor %vm1434_vm12, %vm1435_vm10  ;;  %vm1444_vm15 = vweird.f32 %v1425_v33  ;;  %vm1367_vm3 = vweird.f32 %v2717_v17 }
 0xb2b   :  { %v1430_v36 = vmul.f32 %v1767_v29, %v1429_v30  ;;  %v1351_v61 = vmul.f32 %v2725_v59, %v2706_v27  ;;  %vm1357_vm5 = vweird.f32 %v2725_v59  ;;  %v1381_v55 = vadd.f32 %v2748_v43, %v1376_v18  ;;  %vm2779_vm7 = vmor %vm1366_vm2, %vm1367_vm3 }
 0xb2c   :  { %v1362_v40 = vmul.f32 %v2717_v17, %v1361_v53  ;;  %vm2784_vm8 = vmor %vm1356_vm4, %vm1357_vm5 }
 0xb2d   :  { %v1431_v38 = vmul.f32 0.5, %v1430_v36  ;;  %v1416_v19 = vpop.xlane.xlu0 %1415  ;;  %v1352_v57 = vmul.f32 %v2725_v59, %v1351_v61  ;;  %v1491_v31 = vpop.permute.xlu2 %1490 }
 0xb2e   :  { %v1422_v60 = vmul.f32 %v1416_v19, %v2607_v48  ;;  %v1363_v25 = vmul.f32 0.5, %v1362_v40 }
 0xb2f   :  { %v1432_v8 = vsub.f32 1.5, %v1431_v38 }
 0xb30   :  { %v1773_v49 = vpop.eup %1772  ;;  %v2741_v26 = vadd.f32 1e-05, %v1422_v60  ;;  %v1364_v63 = vsub.f32 1.5, %v1363_v25 }
 0xb31   :  { %v1433_v50 = vmul.f32 %v1767_v29, %v1432_v8  ;;  %v1439_v56 = vmul.f32 %v1773_v49, %v1425_v33  ;;  %vm1445_vm14 = vweird.f32 %v1773_v49 }
 0xb32   :  { %1774 = vrsqrt.f32 %v2741_v26  ;;  %vm1446_vm1 = vmor %vm1444_vm15, %vm1445_vm14  ;;  %v1365_v34 = vmul.f32 %v2717_v17, %v1364_v63  ;;  %vm1454_vm9 = vweird.f32 %v2741_v26 }
 0xb33   :  { %v1437_v9 = vsel %vm1436_vm13, %v1767_v29, %v1433_v50  ;;  %v1440_v0 = vmul.f32 %v1773_v49, %v1439_v56 }
 0xb34   :  { %v1468_v3 = vmul.f32 %v1437_v9, %v2660_v15  ;;  %v1380_v15 = vadd.f32 %v2748_v43, %v1375_v7  ;;  %v1369_v2 = vsel %vm2779_vm7, %v2717_v17, %v1365_v34 }
 0xb35   :  { %v1441_v13 = vmul.f32 0.5, %v1440_v0  ;;  %v1419_v54 = vpop.xlane.xlu1 %1418 }
 0xb36   :  { %v1473_v32 = vmul.f32 %v2743_v52, %v1468_v3  ;;  %v1423_v5 = vmul.f32 %v1419_v54, %v2607_v48  ;;  %v1353_v48 = vmul.f32 0.5, %v1352_v57 }
 0xb37   :  { %v1442_v11 = vsub.f32 1.5, %v1441_v13 }
 0xb38   :  { %v1478_v47 = vadd.f32 %v2750_v44, %v1473_v32  ;;  %v1427_v23 = vadd.f32 1e-05, %v1423_v5  ;;  %v1775_v1 = vpop.eup %1774  ;;  %v1354_v58 = vsub.f32 1.5, %v1353_v48 }
 0xb39   :  { %v1443_v21 = vmul.f32 %v1773_v49, %v1442_v11  ;;  %v1449_v16 = vmul.f32 %v1775_v1, %v2741_v26  ;;  %vm1455_vm6 = vweird.f32 %v1775_v1 }
 0xb3a   :  { %v1482_v22 = vadd.f32 %v1478_v47, %v1380_v15  ;;  %1776 = vrsqrt.f32 %v1427_v23  ;;  %v1355_v27 = vmul.f32 %v2725_v59, %v1354_v58  ;;  %vm1456_vm10 = vmor %vm1454_vm9, %vm1455_vm6  ;;  %vm1464_vm12 = vweird.f32 %v1427_v23 }
 0xb3b   :  { %v1447_v20 = vsel %vm1446_vm1, %v1773_v49, %v1443_v21  ;;  %v1450_v45 = vmul.f32 %v1775_v1, %v1449_v16 }
 0xb3c   :  { %v1469_v37 = vmul.f32 %v1447_v20, %v2667_v6  ;;  %v1502_v29 = vmul.f32 %v1491_v31, %v1482_v22  ;;  %v1359_v50 = vsel %vm2784_vm8, %v2725_v59, %v1355_v27 }
 0xb3d   :  { %v1451_v33 = vmul.f32 0.5, %v1450_v45  ;;  %v1372_v17 = vmul.f32 %v1359_v50, %v2619_v62 }
 0xb3e   :  { %v1474_v30 = vmul.f32 %v2743_v52, %v1469_v37  ;;  %1506 = vst.msk [vmem:[%s2845_s25] sm:$0xff] %vm114_vm0, %v1502_v29 }
 0xb3f   :  { %v1452_v41 = vsub.f32 1.5, %v1451_v33  ;;  %v1377_v3 = vmul.f32 %v2730_v46, %v1372_v17 }
 0xb40   :  { %v1777_v36 = vpop.eup %1776  ;;  %v1479_v6 = vadd.f32 %v2750_v44, %v1474_v30 }
 0xb41   :  { %v1459_v38 = vmul.f32 %v1777_v36, %v1427_v23  ;;  %v1453_v8 = vmul.f32 %v1775_v1, %v1452_v41  ;;  %vm1465_vm11 = vweird.f32 %v1777_v36  ;;  %v1382_v62 = vadd.f32 %v2748_v43, %v1377_v3 }
 0xb42   :  { %v1483_v10 = vadd.f32 %v1479_v6, %v1381_v55  ;;  %vm1466_vm13 = vmor %vm1464_vm12, %vm1465_vm11 }
 0xb43   :  { %v1460_v49 = vmul.f32 %v1777_v36, %v1459_v38  ;;  %v1457_v35 = vsel %vm1456_vm10, %v1775_v1, %v1453_v8 }
 0xb44   :  { %v1503_v53 = vmul.f32 %v2708_v4, %v1483_v10  ;;  %v1373_v4 = vmul.f32 %v1369_v2, %v2630_v39  ;;  %v1470_v51 = vmul.f32 %v1457_v35, %v2674_v24 }
 0xb45   :  { %v1461_v14 = vmul.f32 0.5, %v1460_v49  ;;  %v1497_v13 = vpop.permute.xlu0 %1496 }
 0xb46   :  { %1507 = vst.msk [vmem:[%s2845_s25 + $0x8] sm:$0xff] %vm114_vm0, %v1503_v53  ;;  %v1378_v9 = vmul.f32 %v2730_v46, %v1373_v4  ;;  %v1475_v7 = vmul.f32 %v2743_v52, %v1470_v51 }
 0xb47   :  { %v1462_v56 = vsub.f32 1.5, %v1461_v14 }
 0xb48   :  { %v1383_v39 = vadd.f32 %v2748_v43, %v1378_v9  ;;  %v1480_v40 = vadd.f32 %v2750_v44, %v1475_v7 }
 0xb49   :  { %v1463_v26 = vmul.f32 %v1777_v36, %v1462_v56 }
 0xb4a   :  { %v1484_v32 = vadd.f32 %v1480_v40, %v1382_v62 }
 0xb4b   :  { %v1467_v61 = vsel %vm1466_vm13, %v1777_v36, %v1463_v26 }
 0xb4c   :  { %v1471_v0 = vmul.f32 %v1467_v61, %v2683_v28 }
 0xb4e   :  { %v1476_v59 = vmul.f32 %v2743_v52, %v1471_v0 }
 0xb50   :  { %v1481_v24 = vadd.f32 %v2750_v44, %v1476_v59 }
 0xb52   :  { %v1485_v12 = vadd.f32 %v1481_v24, %v1383_v39 }
 0xb54   :  { %v1505_v54 = vmul.f32 %v1497_v13, %v1485_v12 }
 0xb55   :  { %v1495_v5 = vpop.permute.xlu1 %1494 }
 0xb56   :  { %1509 = vst.msk [vmem:[%s2845_s25 + $0x18] sm:$0xff] %vm114_vm0, %v1505_v54  ;;  %v1504_v28 = vmul.f32 %v1495_v5, %v1484_v32 }
 0xb58   :  { %1508 = vst.msk [vmem:[%s2845_s25 + $0x10] sm:$0xff] %vm114_vm0, %v1504_v28 }

</bundles_post_ra>
